<compile_context>
chip_gen: v5e
topology: v5e:2x2
jax: 0.10.0
libtpu: 0.0.40
codegen_flags: <defaults>
</compile_context>

<pallas_src>
import math
import functools

import jax
import jax.numpy as jnp
from jax import lax
from jax.experimental import pallas as pl
from jax.experimental.pallas import tpu as pltpu


def bert_embedding_kernel(ids_smem,      # (N,)   int32, SMEM (scalar prefetch)
                          tok_hbm,       # (V,E)  token table, raw HBM ref
                          seg_ids_ref,   # (TM,1) int32, VMEM
                          seg_tab_ref,   # (NSEG_PAD,E) VMEM (tiny, resident)
                          pe_ref,        # (P,E)  float32, VMEM (resident)
                          out_ref,       # (TM,E) VMEM
                          gather_buf,    # (TM,E) VMEM scratch for gathered rows
                          sem,           # (2*DEPTH,) DMA semaphores
                          *, num_segments, dma_depth, nslots, s_tiles, unroll):
    tm = out_ref.shape[0]
    vocab = tok_hbm.shape[0]
    t = pl.program_id(0)
    base = t * tm

    def row_copy(r):
        # Clamp defensively so a bad id can never DMA out of bounds
        # (silently remaps out-of-range ids; PyTorch would raise instead).
        row = jnp.clip(ids_smem[base + r], 0, vocab - 1)
        return pltpu.make_async_copy(tok_hbm.at[pl.ds(row, 1)],
                                     gather_buf.at[pl.ds(r, 1)],
                                     sem.at[r % nslots])

    # Prime the gather pipeline: `dma_depth` row fetches in flight.
    for r in range(dma_depth):
        row_copy(r).start()

    # --- VPU work hoisted above the DMA waits (overlaps HBM gather latency) ---
    start = pl.multiple_of((t % s_tiles) * tm, tm)
    partial = pe_ref[pl.ds(start, tm), :].astype(jnp.float32)      # (TM,E)

    segs = seg_ids_ref[...]                                        # (TM,1) int32
    seg_tab = seg_tab_ref[...].astype(jnp.float32)                 # (NSEG_PAD,E)
    for k in range(1, num_segments):                               # row 0 = padding_idx
        partial = partial + jnp.where(segs == k, seg_tab[k:k + 1, :], 0.0)

    # --- Drain loop: issue row r+depth BEFORE waiting on row r ---
    def body(r, carry):
        @pl.when(r + dma_depth < tm)
        def _():
            row_copy(r + dma_depth).start()
        row_copy(r).wait()
        return carry

    lax.fori_loop(0, tm, body, 0, unroll=unroll)

    # TODO(synk): training-mode dropout (pltpu.prng_random_bits mask) fuses here.
    out_ref[...] = (gather_buf[...].astype(jnp.float32) + partial).astype(out_ref.dtype)


def _pick_row_tile(s_pad, n, max_tile=1024):
    """Largest sublane-aligned row tile that divides the work cleanly,
    preferring an even number of grid steps (>= 2) for v7x's 2 TensorCores."""
    cands = [c for c in (1024, 512, 256, 128, 64, 32, 16, 8)
             if c <= max_tile and c <= n
             and (s_pad % c == 0 or (c % s_pad == 0 and n % c == 0))]
    for pred in (lambda c: (n // c) >= 2 and (n // c) % 2 == 0,
                 lambda c: (n // c) >= 2,
                 lambda c: True):
        for c in cands:
            if pred(c):
                return c
    return 8


def bert_embedding(sequence, segment_label, tok_table, seg_table, pe_table,
                   *, max_row_tile=1024, dma_depth=32, out_dtype=None):
    """sequence, segment_label: (B, S) int.  Returns (B, S, E).

    Pass bf16 tables / out_dtype=jnp.bfloat16 to halve HBM traffic (the kernel
    is pure memory-bound); accumulation stays in f32 either way."""
    B, S = sequence.shape
    V, E = tok_table.shape
    nseg = seg_table.shape[0]
    out_dtype = tok_table.dtype if out_dtype is None else out_dtype

    # Pad the sequence axis to a multiple of 8 so every row tile is sublane
    # aligned; padded rows use id 0 / segment 0 and are sliced off at the end.
    S_pad = ((S + 7) // 8) * 8
    if S_pad != S:
        pad = S_pad - S
        sequence = jnp.pad(sequence, ((0, 0), (0, pad)))
        segment_label = jnp.pad(segment_label, ((0, 0), (0, pad)))
    N = B * S_pad

    tm = _pick_row_tile(S_pad, N, max_row_tile)
    num_tiles = N // tm
    depth = max(1, min(dma_depth, tm))
    nslots = 2 * depth
    unroll = min(8, tm)

    ids_flat = sequence.astype(jnp.int32).reshape(N)          # scalar prefetch (SMEM)
    segs2 = segment_label.astype(jnp.int32).reshape(N, 1)     # (N, 1)

    # Positional-encoding slab, kept fully VMEM-resident (constant index map).
    pe = pe_table[:S].astype(jnp.float32)
    if S_pad != S:
        pe = jnp.pad(pe, ((0, S_pad - S), (0, 0)))
    if tm <= S_pad:                      # a tile lies inside one sequence
        s_tiles = S_pad // tm
        pe_res = pe                      # (S_pad, E)
    else:                                # a tile spans whole sequences
        s_tiles = 1
        pe_res = jnp.tile(pe, (tm // S_pad, 1))               # (tm, E)
    P = pe_res.shape[0]

    # Tiny segment table (pad=0, sent_A=1, sent_B=2), sublane-padded.
    nseg_pad = max(8, ((nseg + 7) // 8) * 8)
    seg_pad = jnp.zeros((nseg_pad, E), tok_table.dtype).at[:nseg, :].set(
        seg_table.astype(tok_table.dtype))

    kernel = functools.partial(bert_embedding_kernel, num_segments=nseg,
                               dma_depth=depth, nslots=nslots,
                               s_tiles=s_tiles, unroll=unroll)

    out_flat = pl.pallas_call(
        kernel,
        out_shape=jax.ShapeDtypeStruct((N, E), out_dtype),
        grid_spec=pltpu.PrefetchScalarGridSpec(
            num_scalar_prefetch=1,
            grid=(num_tiles,),
            in_specs=[
                pl.BlockSpec(memory_space=pl.ANY),                    # token table (HBM)
                pl.BlockSpec((tm, 1), lambda t, ids: (t, 0)),         # segment ids
                pl.BlockSpec((nseg_pad, E), lambda t, ids: (0, 0)),   # segment table (resident)
                pl.BlockSpec((P, E), lambda t, ids: (0, 0)),          # PE slab (resident)
            ],
            out_specs=pl.BlockSpec((tm, E), lambda t, ids: (t, 0)),
            scratch_shapes=[
                pltpu.VMEM((tm, E), tok_table.dtype),                 # gathered token rows
                pltpu.SemaphoreType.DMA((nslots,)),
            ],
        ),
        compiler_params=pltpu.CompilerParams(
            dimension_semantics=("parallel",)),
    )(ids_flat, tok_table, segs2, seg_pad, pe_res)

    return out_flat.reshape(B, S_pad, E)[:, :S, :]


def make_positional_encoding(max_len, d_model):
    pos = jnp.arange(max_len, dtype=jnp.float32)[:, None]
    div = jnp.exp(jnp.arange(0, d_model, 2, dtype=jnp.float32)
                  * (-math.log(10000.0) / d_model))
    pe = jnp.zeros((max_len, d_model), jnp.float32)
    pe = pe.at[:, 0::2].set(jnp.sin(pos * div))
    pe = pe.at[:, 1::2].set(jnp.cos(pos * div))
    return pe


if __name__ == "__main__":
    # Small shapes consistent with the module.
    B, S = 2, 8
    VOCAB, EMBED, MAX_LEN = 32, 128, 16
    NUM_SEG = 3  # padding=0, sent_A=1, sent_B=2

    key = jax.random.PRNGKey(0)
    k_tok, k_seg, k_ids, k_lab = jax.random.split(key, 4)

    # nn.Embedding ~ N(0,1) init, padding_idx=0 row zeroed.
    tok_table = jax.random.normal(k_tok, (VOCAB, EMBED), jnp.float32)
    tok_table = tok_table.at[0].set(0.0)
    seg_table = jax.random.normal(k_seg, (NUM_SEG, EMBED), jnp.float32)
    seg_table = seg_table.at[0].set(0.0)
    pe_table = make_positional_encoding(MAX_LEN, EMBED)

    sequence = jax.random.randint(k_ids, (B, S), 0, VOCAB, dtype=jnp.int32)
    segment_label = jax.random.randint(k_lab, (B, S), 0, NUM_SEG, dtype=jnp.int32)

    out = bert_embedding(sequence, segment_label, tok_table, seg_table, pe_table)
    out = jax.block_until_ready(out)

    # Pure-JAX reference (eval-mode dropout = identity).
    ref = (pe_table[:S][None, :, :]
           + tok_table[sequence]
           + seg_table[segment_label])
    assert out.shape == (B, S, EMBED), out.shape
    err = float(jnp.max(jnp.abs(out.astype(jnp.float32) - ref)))
    assert err < 1e-5, err

    print("KERNEL_OK")
</pallas_src>

<mosaic_0001>
module attributes {stable_mosaic.version = 11 : i64} {
  func.func @bert_embedding_kernel(%arg0: i32, %arg1: memref<16xi32, #tpu.memory_space<smem>>, %arg2: memref<32x128xf32, #tpu.memory_space<any>>, %arg3: memref<8x1xi32, #tpu.memory_space<vmem>>, %arg4: memref<8x128xf32, #tpu.memory_space<vmem>>, %arg5: memref<8x128xf32, #tpu.memory_space<vmem>>, %arg6: memref<8x128xf32, #tpu.memory_space<vmem>>, %arg7: memref<8x128xf32, #tpu.memory_space<vmem>>, %arg8: memref<16x!tpu.dma_semaphore, #tpu.memory_space<semaphore_mem>>) attributes {dimension_semantics = [#tpu.dimension_semantics<parallel>], iteration_bounds = array<i64: 2>, scalar_prefetch = 1 : i64, scratch_operands = 2 : i64, tpu.core_type = #tpu.core_type<tc>, window_params = [{}, {transform_indices = @transform_1, window_bounds = array<i64: 8, 1>}, {pipeline_mode = #tpu.pipeline_mode<synchronous>, transform_indices = @transform_2, window_bounds = array<i64: 8, 128>}, {pipeline_mode = #tpu.pipeline_mode<synchronous>, transform_indices = @transform_3, window_bounds = array<i64: 8, 128>}, {transform_indices = @transform_4, window_bounds = array<i64: 8, 128>}]} {
    %c8_i32 = arith.constant 8 : i32
    %0 = arith.muli %arg0, %c8_i32 : i32
    %c0_i32 = arith.constant 0 : i32
    %1 = arith.addi %0, %c0_i32 : i32
    %2 = arith.index_cast %1 : i32 to index
    %3 = memref.load %arg1[%2] : memref<16xi32, #tpu.memory_space<smem>>
    %c0_i32_0 = arith.constant 0 : i32
    %c31_i32 = arith.constant 31 : i32
    %4 = arith.maxsi %c0_i32_0, %3 : i32
    %5 = arith.minsi %c31_i32, %4 : i32
    %c0_i32_1 = arith.constant 0 : i32
    %c0_i32_2 = arith.constant 0 : i32
    %6 = tpu.memref_slice %arg2[%5, %c0_i32_2] : memref<32x128xf32, #tpu.memory_space<any>> -> memref<1x128xf32, #tpu.memory_space<any>>
    %c0_i32_3 = arith.constant 0 : i32
    %c0_i32_4 = arith.constant 0 : i32
    %7 = tpu.memref_slice %arg7[%c0_i32_3, %c0_i32_4] : memref<8x128xf32, #tpu.memory_space<vmem>> -> memref<1x128xf32, #tpu.memory_space<vmem>>
    %8 = tpu.memref_slice %arg8[%c0_i32_1] : memref<16x!tpu.dma_semaphore, #tpu.memory_space<semaphore_mem>> -> memref<1x!tpu.dma_semaphore, #tpu.memory_space<semaphore_mem>>
    %9 = tpu.memref_squeeze %8 : memref<1x!tpu.dma_semaphore, #tpu.memory_space<semaphore_mem>> -> memref<!tpu.dma_semaphore, #tpu.memory_space<semaphore_mem>>
    tpu.enqueue_dma source(%6 : memref<1x128xf32, #tpu.memory_space<any>>) target(%7 : memref<1x128xf32, #tpu.memory_space<vmem>>) target_semaphore(%9 : memref<!tpu.dma_semaphore, #tpu.memory_space<semaphore_mem>>)
    %c1_i32 = arith.constant 1 : i32
    %10 = arith.addi %0, %c1_i32 : i32
    %11 = arith.index_cast %10 : i32 to index
    %12 = memref.load %arg1[%11] : memref<16xi32, #tpu.memory_space<smem>>
    %c0_i32_5 = arith.constant 0 : i32
    %c31_i32_6 = arith.constant 31 : i32
    %13 = arith.maxsi %c0_i32_5, %12 : i32
    %14 = arith.minsi %c31_i32_6, %13 : i32
    %c1_i32_7 = arith.constant 1 : i32
    %c0_i32_8 = arith.constant 0 : i32
    %15 = tpu.memref_slice %arg2[%14, %c0_i32_8] : memref<32x128xf32, #tpu.memory_space<any>> -> memref<1x128xf32, #tpu.memory_space<any>>
    %c1_i32_9 = arith.constant 1 : i32
    %c0_i32_10 = arith.constant 0 : i32
    %16 = tpu.memref_slice %arg7[%c1_i32_9, %c0_i32_10] : memref<8x128xf32, #tpu.memory_space<vmem>> -> memref<1x128xf32, #tpu.memory_space<vmem>>
    %17 = tpu.memref_slice %arg8[%c1_i32_7] : memref<16x!tpu.dma_semaphore, #tpu.memory_space<semaphore_mem>> -> memref<1x!tpu.dma_semaphore, #tpu.memory_space<semaphore_mem>>
    %18 = tpu.memref_squeeze %17 : memref<1x!tpu.dma_semaphore, #tpu.memory_space<semaphore_mem>> -> memref<!tpu.dma_semaphore, #tpu.memory_space<semaphore_mem>>
    tpu.enqueue_dma source(%15 : memref<1x128xf32, #tpu.memory_space<any>>) target(%16 : memref<1x128xf32, #tpu.memory_space<vmem>>) target_semaphore(%18 : memref<!tpu.dma_semaphore, #tpu.memory_space<semaphore_mem>>)
    %c2_i32 = arith.constant 2 : i32
    %19 = arith.addi %0, %c2_i32 : i32
    %20 = arith.index_cast %19 : i32 to index
    %21 = memref.load %arg1[%20] : memref<16xi32, #tpu.memory_space<smem>>
    %c0_i32_11 = arith.constant 0 : i32
    %c31_i32_12 = arith.constant 31 : i32
    %22 = arith.maxsi %c0_i32_11, %21 : i32
    %23 = arith.minsi %c31_i32_12, %22 : i32
    %c2_i32_13 = arith.constant 2 : i32
    %c0_i32_14 = arith.constant 0 : i32
    %24 = tpu.memref_slice %arg2[%23, %c0_i32_14] : memref<32x128xf32, #tpu.memory_space<any>> -> memref<1x128xf32, #tpu.memory_space<any>>
    %c2_i32_15 = arith.constant 2 : i32
    %c0_i32_16 = arith.constant 0 : i32
    %25 = tpu.memref_slice %arg7[%c2_i32_15, %c0_i32_16] : memref<8x128xf32, #tpu.memory_space<vmem>> -> memref<1x128xf32, #tpu.memory_space<vmem>>
    %26 = tpu.memref_slice %arg8[%c2_i32_13] : memref<16x!tpu.dma_semaphore, #tpu.memory_space<semaphore_mem>> -> memref<1x!tpu.dma_semaphore, #tpu.memory_space<semaphore_mem>>
    %27 = tpu.memref_squeeze %26 : memref<1x!tpu.dma_semaphore, #tpu.memory_space<semaphore_mem>> -> memref<!tpu.dma_semaphore, #tpu.memory_space<semaphore_mem>>
    tpu.enqueue_dma source(%24 : memref<1x128xf32, #tpu.memory_space<any>>) target(%25 : memref<1x128xf32, #tpu.memory_space<vmem>>) target_semaphore(%27 : memref<!tpu.dma_semaphore, #tpu.memory_space<semaphore_mem>>)
    %c3_i32 = arith.constant 3 : i32
    %28 = arith.addi %0, %c3_i32 : i32
    %29 = arith.index_cast %28 : i32 to index
    %30 = memref.load %arg1[%29] : memref<16xi32, #tpu.memory_space<smem>>
    %c0_i32_17 = arith.constant 0 : i32
    %c31_i32_18 = arith.constant 31 : i32
    %31 = arith.maxsi %c0_i32_17, %30 : i32
    %32 = arith.minsi %c31_i32_18, %31 : i32
    %c3_i32_19 = arith.constant 3 : i32
    %c0_i32_20 = arith.constant 0 : i32
    %33 = tpu.memref_slice %arg2[%32, %c0_i32_20] : memref<32x128xf32, #tpu.memory_space<any>> -> memref<1x128xf32, #tpu.memory_space<any>>
    %c3_i32_21 = arith.constant 3 : i32
    %c0_i32_22 = arith.constant 0 : i32
    %34 = tpu.memref_slice %arg7[%c3_i32_21, %c0_i32_22] : memref<8x128xf32, #tpu.memory_space<vmem>> -> memref<1x128xf32, #tpu.memory_space<vmem>>
    %35 = tpu.memref_slice %arg8[%c3_i32_19] : memref<16x!tpu.dma_semaphore, #tpu.memory_space<semaphore_mem>> -> memref<1x!tpu.dma_semaphore, #tpu.memory_space<semaphore_mem>>
    %36 = tpu.memref_squeeze %35 : memref<1x!tpu.dma_semaphore, #tpu.memory_space<semaphore_mem>> -> memref<!tpu.dma_semaphore, #tpu.memory_space<semaphore_mem>>
    tpu.enqueue_dma source(%33 : memref<1x128xf32, #tpu.memory_space<any>>) target(%34 : memref<1x128xf32, #tpu.memory_space<vmem>>) target_semaphore(%36 : memref<!tpu.dma_semaphore, #tpu.memory_space<semaphore_mem>>)
    %c4_i32 = arith.constant 4 : i32
    %37 = arith.addi %0, %c4_i32 : i32
    %38 = arith.index_cast %37 : i32 to index
    %39 = memref.load %arg1[%38] : memref<16xi32, #tpu.memory_space<smem>>
    %c0_i32_23 = arith.constant 0 : i32
    %c31_i32_24 = arith.constant 31 : i32
    %40 = arith.maxsi %c0_i32_23, %39 : i32
    %41 = arith.minsi %c31_i32_24, %40 : i32
    %c4_i32_25 = arith.constant 4 : i32
    %c0_i32_26 = arith.constant 0 : i32
    %42 = tpu.memref_slice %arg2[%41, %c0_i32_26] : memref<32x128xf32, #tpu.memory_space<any>> -> memref<1x128xf32, #tpu.memory_space<any>>
    %c4_i32_27 = arith.constant 4 : i32
    %c0_i32_28 = arith.constant 0 : i32
    %43 = tpu.memref_slice %arg7[%c4_i32_27, %c0_i32_28] : memref<8x128xf32, #tpu.memory_space<vmem>> -> memref<1x128xf32, #tpu.memory_space<vmem>>
    %44 = tpu.memref_slice %arg8[%c4_i32_25] : memref<16x!tpu.dma_semaphore, #tpu.memory_space<semaphore_mem>> -> memref<1x!tpu.dma_semaphore, #tpu.memory_space<semaphore_mem>>
    %45 = tpu.memref_squeeze %44 : memref<1x!tpu.dma_semaphore, #tpu.memory_space<semaphore_mem>> -> memref<!tpu.dma_semaphore, #tpu.memory_space<semaphore_mem>>
    tpu.enqueue_dma source(%42 : memref<1x128xf32, #tpu.memory_space<any>>) target(%43 : memref<1x128xf32, #tpu.memory_space<vmem>>) target_semaphore(%45 : memref<!tpu.dma_semaphore, #tpu.memory_space<semaphore_mem>>)
    %c5_i32 = arith.constant 5 : i32
    %46 = arith.addi %0, %c5_i32 : i32
    %47 = arith.index_cast %46 : i32 to index
    %48 = memref.load %arg1[%47] : memref<16xi32, #tpu.memory_space<smem>>
    %c0_i32_29 = arith.constant 0 : i32
    %c31_i32_30 = arith.constant 31 : i32
    %49 = arith.maxsi %c0_i32_29, %48 : i32
    %50 = arith.minsi %c31_i32_30, %49 : i32
    %c5_i32_31 = arith.constant 5 : i32
    %c0_i32_32 = arith.constant 0 : i32
    %51 = tpu.memref_slice %arg2[%50, %c0_i32_32] : memref<32x128xf32, #tpu.memory_space<any>> -> memref<1x128xf32, #tpu.memory_space<any>>
    %c5_i32_33 = arith.constant 5 : i32
    %c0_i32_34 = arith.constant 0 : i32
    %52 = tpu.memref_slice %arg7[%c5_i32_33, %c0_i32_34] : memref<8x128xf32, #tpu.memory_space<vmem>> -> memref<1x128xf32, #tpu.memory_space<vmem>>
    %53 = tpu.memref_slice %arg8[%c5_i32_31] : memref<16x!tpu.dma_semaphore, #tpu.memory_space<semaphore_mem>> -> memref<1x!tpu.dma_semaphore, #tpu.memory_space<semaphore_mem>>
    %54 = tpu.memref_squeeze %53 : memref<1x!tpu.dma_semaphore, #tpu.memory_space<semaphore_mem>> -> memref<!tpu.dma_semaphore, #tpu.memory_space<semaphore_mem>>
    tpu.enqueue_dma source(%51 : memref<1x128xf32, #tpu.memory_space<any>>) target(%52 : memref<1x128xf32, #tpu.memory_space<vmem>>) target_semaphore(%54 : memref<!tpu.dma_semaphore, #tpu.memory_space<semaphore_mem>>)
    %c6_i32 = arith.constant 6 : i32
    %55 = arith.addi %0, %c6_i32 : i32
    %56 = arith.index_cast %55 : i32 to index
    %57 = memref.load %arg1[%56] : memref<16xi32, #tpu.memory_space<smem>>
    %c0_i32_35 = arith.constant 0 : i32
    %c31_i32_36 = arith.constant 31 : i32
    %58 = arith.maxsi %c0_i32_35, %57 : i32
    %59 = arith.minsi %c31_i32_36, %58 : i32
    %c6_i32_37 = arith.constant 6 : i32
    %c0_i32_38 = arith.constant 0 : i32
    %60 = tpu.memref_slice %arg2[%59, %c0_i32_38] : memref<32x128xf32, #tpu.memory_space<any>> -> memref<1x128xf32, #tpu.memory_space<any>>
    %c6_i32_39 = arith.constant 6 : i32
    %c0_i32_40 = arith.constant 0 : i32
    %61 = tpu.memref_slice %arg7[%c6_i32_39, %c0_i32_40] : memref<8x128xf32, #tpu.memory_space<vmem>> -> memref<1x128xf32, #tpu.memory_space<vmem>>
    %62 = tpu.memref_slice %arg8[%c6_i32_37] : memref<16x!tpu.dma_semaphore, #tpu.memory_space<semaphore_mem>> -> memref<1x!tpu.dma_semaphore, #tpu.memory_space<semaphore_mem>>
    %63 = tpu.memref_squeeze %62 : memref<1x!tpu.dma_semaphore, #tpu.memory_space<semaphore_mem>> -> memref<!tpu.dma_semaphore, #tpu.memory_space<semaphore_mem>>
    tpu.enqueue_dma source(%60 : memref<1x128xf32, #tpu.memory_space<any>>) target(%61 : memref<1x128xf32, #tpu.memory_space<vmem>>) target_semaphore(%63 : memref<!tpu.dma_semaphore, #tpu.memory_space<semaphore_mem>>)
    %c7_i32 = arith.constant 7 : i32
    %64 = arith.addi %0, %c7_i32 : i32
    %65 = arith.index_cast %64 : i32 to index
    %66 = memref.load %arg1[%65] : memref<16xi32, #tpu.memory_space<smem>>
    %c0_i32_41 = arith.constant 0 : i32
    %c31_i32_42 = arith.constant 31 : i32
    %67 = arith.maxsi %c0_i32_41, %66 : i32
    %68 = arith.minsi %c31_i32_42, %67 : i32
    %c7_i32_43 = arith.constant 7 : i32
    %c0_i32_44 = arith.constant 0 : i32
    %69 = tpu.memref_slice %arg2[%68, %c0_i32_44] : memref<32x128xf32, #tpu.memory_space<any>> -> memref<1x128xf32, #tpu.memory_space<any>>
    %c7_i32_45 = arith.constant 7 : i32
    %c0_i32_46 = arith.constant 0 : i32
    %70 = tpu.memref_slice %arg7[%c7_i32_45, %c0_i32_46] : memref<8x128xf32, #tpu.memory_space<vmem>> -> memref<1x128xf32, #tpu.memory_space<vmem>>
    %71 = tpu.memref_slice %arg8[%c7_i32_43] : memref<16x!tpu.dma_semaphore, #tpu.memory_space<semaphore_mem>> -> memref<1x!tpu.dma_semaphore, #tpu.memory_space<semaphore_mem>>
    %72 = tpu.memref_squeeze %71 : memref<1x!tpu.dma_semaphore, #tpu.memory_space<semaphore_mem>> -> memref<!tpu.dma_semaphore, #tpu.memory_space<semaphore_mem>>
    tpu.enqueue_dma source(%69 : memref<1x128xf32, #tpu.memory_space<any>>) target(%70 : memref<1x128xf32, #tpu.memory_space<vmem>>) target_semaphore(%72 : memref<!tpu.dma_semaphore, #tpu.memory_space<semaphore_mem>>)
    %c1_i32_47 = arith.constant 1 : i32
    %c0_i32_48 = arith.constant 0 : i32
    %73 = arith.cmpi eq, %c1_i32_47, %c0_i32_48 : i32
    %c1_i32_49 = arith.constant 1 : i32
    %74 = arith.select %73, %c1_i32_49, %c1_i32_47 : i32
    %75 = arith.remsi %arg0, %74 : i32
    %c0_i32_50 = arith.constant 0 : i32
    %76 = arith.cmpi ne, %75, %c0_i32_50 : i32
    %c0_i32_51 = arith.constant 0 : i32
    %77 = arith.cmpi slt, %75, %c0_i32_51 : i32
    %c0_i32_52 = arith.constant 0 : i32
    %78 = arith.cmpi slt, %74, %c0_i32_52 : i32
    %79 = arith.xori %77, %78 : i1
    %80 = arith.andi %79, %76 : i1
    %81 = arith.addi %75, %74 : i32
    %82 = arith.select %80, %81, %75 : i32
    %c8_i32_53 = arith.constant 8 : i32
    %83 = arith.muli %82, %c8_i32_53 : i32
    %84 = tpu.assume_multiple %83, 8 : i32
    %85 = arith.index_cast %84 : i32 to index
    %c0 = arith.constant 0 : index
    %86 = vector.load %arg5[%85, %c0] : memref<8x128xf32, #tpu.memory_space<vmem>>, vector<8x128xf32>
    %c0_54 = arith.constant 0 : index
    %c0_55 = arith.constant 0 : index
    %87 = vector.load %arg3[%c0_54, %c0_55] : memref<8x1xi32, #tpu.memory_space<vmem>>, vector<8x1xi32>
    %c0_56 = arith.constant 0 : index
    %c0_57 = arith.constant 0 : index
    %88 = vector.load %arg4[%c0_56, %c0_57] : memref<8x128xf32, #tpu.memory_space<vmem>>, vector<8x128xf32>
    %c1_i32_58 = arith.constant 1 : i32
    %89 = vector.broadcast %c1_i32_58 : i32 to vector<8x1xi32>
    %90 = arith.cmpi eq, %87, %89 : vector<8x1xi32>
    %91 = vector.extract_strided_slice %88 {offsets = [1, 0], sizes = [1, 128], strides = [1, 1]} : vector<8x128xf32> to vector<1x128xf32>
    %cst = arith.constant 0.000000e+00 : f32
    %92 = vector.shape_cast %90 : vector<8x1xi1> to vector<8x1xi1>
    %93 = vector.broadcast %92 : vector<8x1xi1> to vector<8x128xi1>
    %94 = vector.shape_cast %91 : vector<1x128xf32> to vector<1x128xf32>
    %95 = vector.broadcast %94 : vector<1x128xf32> to vector<8x128xf32>
    %96 = vector.broadcast %cst : f32 to vector<8x128xf32>
    %97 = arith.select %93, %95, %96 : vector<8x128xi1>, vector<8x128xf32>
    %98 = arith.addf %86, %97 : vector<8x128xf32>
    %c2_i32_59 = arith.constant 2 : i32
    %99 = vector.broadcast %c2_i32_59 : i32 to vector<8x1xi32>
    %100 = arith.cmpi eq, %87, %99 : vector<8x1xi32>
    %101 = vector.extract_strided_slice %88 {offsets = [2, 0], sizes = [1, 128], strides = [1, 1]} : vector<8x128xf32> to vector<1x128xf32>
    %cst_60 = arith.constant 0.000000e+00 : f32
    %102 = vector.shape_cast %100 : vector<8x1xi1> to vector<8x1xi1>
    %103 = vector.broadcast %102 : vector<8x1xi1> to vector<8x128xi1>
    %104 = vector.shape_cast %101 : vector<1x128xf32> to vector<1x128xf32>
    %105 = vector.broadcast %104 : vector<1x128xf32> to vector<8x128xf32>
    %106 = vector.broadcast %cst_60 : f32 to vector<8x128xf32>
    %107 = arith.select %103, %105, %106 : vector<8x128xi1>, vector<8x128xf32>
    %108 = arith.addf %98, %107 : vector<8x128xf32>
    %c0_i32_61 = arith.constant 0 : i32
    %c8_i32_62 = arith.constant 8 : i32
    %109 = arith.addi %c0_i32_61, %c8_i32_62 : i32
    %c8_i32_63 = arith.constant 8 : i32
    %110 = arith.cmpi slt, %109, %c8_i32_63 : i32
    %111 = arith.extui %110 : i1 to i32
    %c0_i32_64 = arith.constant 0 : i32
    %112 = arith.cmpi ne, %111, %c0_i32_64 : i32
    scf.if %112 {
      %c8_i32_177 = arith.constant 8 : i32
      %296 = arith.addi %c0_i32_61, %c8_i32_177 : i32
      %297 = arith.addi %0, %296 : i32
      %298 = arith.index_cast %297 : i32 to index
      %299 = memref.load %arg1[%298] : memref<16xi32, #tpu.memory_space<smem>>
      %c0_i32_178 = arith.constant 0 : i32
      %c31_i32_179 = arith.constant 31 : i32
      %300 = arith.maxsi %c0_i32_178, %299 : i32
      %301 = arith.minsi %c31_i32_179, %300 : i32
      %c16_i32_180 = arith.constant 16 : i32
      %c0_i32_181 = arith.constant 0 : i32
      %302 = arith.cmpi eq, %c16_i32_180, %c0_i32_181 : i32
      %c1_i32_182 = arith.constant 1 : i32
      %303 = arith.select %302, %c1_i32_182, %c16_i32_180 : i32
      %304 = arith.remsi %296, %303 : i32
      %c0_i32_183 = arith.constant 0 : i32
      %305 = arith.cmpi ne, %304, %c0_i32_183 : i32
      %c0_i32_184 = arith.constant 0 : i32
      %306 = arith.cmpi slt, %304, %c0_i32_184 : i32
      %c0_i32_185 = arith.constant 0 : i32
      %307 = arith.cmpi slt, %303, %c0_i32_185 : i32
      %308 = arith.xori %306, %307 : i1
      %309 = arith.andi %308, %305 : i1
      %310 = arith.addi %304, %303 : i32
      %311 = arith.select %309, %310, %304 : i32
      %c0_i32_186 = arith.constant 0 : i32
      %312 = tpu.memref_slice %arg2[%301, %c0_i32_186] : memref<32x128xf32, #tpu.memory_space<any>> -> memref<1x128xf32, #tpu.memory_space<any>>
      %c0_i32_187 = arith.constant 0 : i32
      %313 = tpu.memref_slice %arg7[%296, %c0_i32_187] : memref<8x128xf32, #tpu.memory_space<vmem>> -> memref<1x128xf32, #tpu.memory_space<vmem>>
      %314 = tpu.memref_slice %arg8[%311] : memref<16x!tpu.dma_semaphore, #tpu.memory_space<semaphore_mem>> -> memref<1x!tpu.dma_semaphore, #tpu.memory_space<semaphore_mem>>
      %315 = tpu.memref_squeeze %314 : memref<1x!tpu.dma_semaphore, #tpu.memory_space<semaphore_mem>> -> memref<!tpu.dma_semaphore, #tpu.memory_space<semaphore_mem>>
      tpu.enqueue_dma source(%312 : memref<1x128xf32, #tpu.memory_space<any>>) target(%313 : memref<1x128xf32, #tpu.memory_space<vmem>>) target_semaphore(%315 : memref<!tpu.dma_semaphore, #tpu.memory_space<semaphore_mem>>)
    } else {
    }
    %113 = arith.addi %0, %c0_i32_61 : i32
    %114 = arith.index_cast %113 : i32 to index
    %115 = memref.load %arg1[%114] : memref<16xi32, #tpu.memory_space<smem>>
    %c0_i32_65 = arith.constant 0 : i32
    %c31_i32_66 = arith.constant 31 : i32
    %116 = arith.maxsi %c0_i32_65, %115 : i32
    %117 = arith.minsi %c31_i32_66, %116 : i32
    %c16_i32 = arith.constant 16 : i32
    %c0_i32_67 = arith.constant 0 : i32
    %118 = arith.cmpi eq, %c16_i32, %c0_i32_67 : i32
    %c1_i32_68 = arith.constant 1 : i32
    %119 = arith.select %118, %c1_i32_68, %c16_i32 : i32
    %120 = arith.remsi %c0_i32_61, %119 : i32
    %c0_i32_69 = arith.constant 0 : i32
    %121 = arith.cmpi ne, %120, %c0_i32_69 : i32
    %c0_i32_70 = arith.constant 0 : i32
    %122 = arith.cmpi slt, %120, %c0_i32_70 : i32
    %c0_i32_71 = arith.constant 0 : i32
    %123 = arith.cmpi slt, %119, %c0_i32_71 : i32
    %124 = arith.xori %122, %123 : i1
    %125 = arith.andi %124, %121 : i1
    %126 = arith.addi %120, %119 : i32
    %127 = arith.select %125, %126, %120 : i32
    %c0_i32_72 = arith.constant 0 : i32
    %128 = tpu.memref_slice %arg2[%117, %c0_i32_72] : memref<32x128xf32, #tpu.memory_space<any>> -> memref<1x128xf32, #tpu.memory_space<any>>
    %c0_i32_73 = arith.constant 0 : i32
    %129 = tpu.memref_slice %arg7[%c0_i32_61, %c0_i32_73] : memref<8x128xf32, #tpu.memory_space<vmem>> -> memref<1x128xf32, #tpu.memory_space<vmem>>
    %130 = tpu.memref_slice %arg8[%127] : memref<16x!tpu.dma_semaphore, #tpu.memory_space<semaphore_mem>> -> memref<1x!tpu.dma_semaphore, #tpu.memory_space<semaphore_mem>>
    %131 = tpu.memref_squeeze %130 : memref<1x!tpu.dma_semaphore, #tpu.memory_space<semaphore_mem>> -> memref<!tpu.dma_semaphore, #tpu.memory_space<semaphore_mem>>
    tpu.wait_dma2 semaphore(%131 : memref<!tpu.dma_semaphore, #tpu.memory_space<semaphore_mem>>) src(%128 : memref<1x128xf32, #tpu.memory_space<any>>) dst(%129 : memref<1x128xf32, #tpu.memory_space<vmem>>)
    %c1_i32_74 = arith.constant 1 : i32
    %c8_i32_75 = arith.constant 8 : i32
    %132 = arith.addi %c1_i32_74, %c8_i32_75 : i32
    %c8_i32_76 = arith.constant 8 : i32
    %133 = arith.cmpi slt, %132, %c8_i32_76 : i32
    %134 = arith.extui %133 : i1 to i32
    %c0_i32_77 = arith.constant 0 : i32
    %135 = arith.cmpi ne, %134, %c0_i32_77 : i32
    scf.if %135 {
      %c8_i32_177 = arith.constant 8 : i32
      %296 = arith.addi %c1_i32_74, %c8_i32_177 : i32
      %297 = arith.addi %0, %296 : i32
      %298 = arith.index_cast %297 : i32 to index
      %299 = memref.load %arg1[%298] : memref<16xi32, #tpu.memory_space<smem>>
      %c0_i32_178 = arith.constant 0 : i32
      %c31_i32_179 = arith.constant 31 : i32
      %300 = arith.maxsi %c0_i32_178, %299 : i32
      %301 = arith.minsi %c31_i32_179, %300 : i32
      %c16_i32_180 = arith.constant 16 : i32
      %c0_i32_181 = arith.constant 0 : i32
      %302 = arith.cmpi eq, %c16_i32_180, %c0_i32_181 : i32
      %c1_i32_182 = arith.constant 1 : i32
      %303 = arith.select %302, %c1_i32_182, %c16_i32_180 : i32
      %304 = arith.remsi %296, %303 : i32
      %c0_i32_183 = arith.constant 0 : i32
      %305 = arith.cmpi ne, %304, %c0_i32_183 : i32
      %c0_i32_184 = arith.constant 0 : i32
      %306 = arith.cmpi slt, %304, %c0_i32_184 : i32
      %c0_i32_185 = arith.constant 0 : i32
      %307 = arith.cmpi slt, %303, %c0_i32_185 : i32
      %308 = arith.xori %306, %307 : i1
      %309 = arith.andi %308, %305 : i1
      %310 = arith.addi %304, %303 : i32
      %311 = arith.select %309, %310, %304 : i32
      %c0_i32_186 = arith.constant 0 : i32
      %312 = tpu.memref_slice %arg2[%301, %c0_i32_186] : memref<32x128xf32, #tpu.memory_space<any>> -> memref<1x128xf32, #tpu.memory_space<any>>
      %c0_i32_187 = arith.constant 0 : i32
      %313 = tpu.memref_slice %arg7[%296, %c0_i32_187] : memref<8x128xf32, #tpu.memory_space<vmem>> -> memref<1x128xf32, #tpu.memory_space<vmem>>
      %314 = tpu.memref_slice %arg8[%311] : memref<16x!tpu.dma_semaphore, #tpu.memory_space<semaphore_mem>> -> memref<1x!tpu.dma_semaphore, #tpu.memory_space<semaphore_mem>>
      %315 = tpu.memref_squeeze %314 : memref<1x!tpu.dma_semaphore, #tpu.memory_space<semaphore_mem>> -> memref<!tpu.dma_semaphore, #tpu.memory_space<semaphore_mem>>
      tpu.enqueue_dma source(%312 : memref<1x128xf32, #tpu.memory_space<any>>) target(%313 : memref<1x128xf32, #tpu.memory_space<vmem>>) target_semaphore(%315 : memref<!tpu.dma_semaphore, #tpu.memory_space<semaphore_mem>>)
    } else {
    }
    %136 = arith.addi %0, %c1_i32_74 : i32
    %137 = arith.index_cast %136 : i32 to index
    %138 = memref.load %arg1[%137] : memref<16xi32, #tpu.memory_space<smem>>
    %c0_i32_78 = arith.constant 0 : i32
    %c31_i32_79 = arith.constant 31 : i32
    %139 = arith.maxsi %c0_i32_78, %138 : i32
    %140 = arith.minsi %c31_i32_79, %139 : i32
    %c16_i32_80 = arith.constant 16 : i32
    %c0_i32_81 = arith.constant 0 : i32
    %141 = arith.cmpi eq, %c16_i32_80, %c0_i32_81 : i32
    %c1_i32_82 = arith.constant 1 : i32
    %142 = arith.select %141, %c1_i32_82, %c16_i32_80 : i32
    %143 = arith.remsi %c1_i32_74, %142 : i32
    %c0_i32_83 = arith.constant 0 : i32
    %144 = arith.cmpi ne, %143, %c0_i32_83 : i32
    %c0_i32_84 = arith.constant 0 : i32
    %145 = arith.cmpi slt, %143, %c0_i32_84 : i32
    %c0_i32_85 = arith.constant 0 : i32
    %146 = arith.cmpi slt, %142, %c0_i32_85 : i32
    %147 = arith.xori %145, %146 : i1
    %148 = arith.andi %147, %144 : i1
    %149 = arith.addi %143, %142 : i32
    %150 = arith.select %148, %149, %143 : i32
    %c0_i32_86 = arith.constant 0 : i32
    %151 = tpu.memref_slice %arg2[%140, %c0_i32_86] : memref<32x128xf32, #tpu.memory_space<any>> -> memref<1x128xf32, #tpu.memory_space<any>>
    %c0_i32_87 = arith.constant 0 : i32
    %152 = tpu.memref_slice %arg7[%c1_i32_74, %c0_i32_87] : memref<8x128xf32, #tpu.memory_space<vmem>> -> memref<1x128xf32, #tpu.memory_space<vmem>>
    %153 = tpu.memref_slice %arg8[%150] : memref<16x!tpu.dma_semaphore, #tpu.memory_space<semaphore_mem>> -> memref<1x!tpu.dma_semaphore, #tpu.memory_space<semaphore_mem>>
    %154 = tpu.memref_squeeze %153 : memref<1x!tpu.dma_semaphore, #tpu.memory_space<semaphore_mem>> -> memref<!tpu.dma_semaphore, #tpu.memory_space<semaphore_mem>>
    tpu.wait_dma2 semaphore(%154 : memref<!tpu.dma_semaphore, #tpu.memory_space<semaphore_mem>>) src(%151 : memref<1x128xf32, #tpu.memory_space<any>>) dst(%152 : memref<1x128xf32, #tpu.memory_space<vmem>>)
    %c2_i32_88 = arith.constant 2 : i32
    %c8_i32_89 = arith.constant 8 : i32
    %155 = arith.addi %c2_i32_88, %c8_i32_89 : i32
    %c8_i32_90 = arith.constant 8 : i32
    %156 = arith.cmpi slt, %155, %c8_i32_90 : i32
    %157 = arith.extui %156 : i1 to i32
    %c0_i32_91 = arith.constant 0 : i32
    %158 = arith.cmpi ne, %157, %c0_i32_91 : i32
    scf.if %158 {
      %c8_i32_177 = arith.constant 8 : i32
      %296 = arith.addi %c2_i32_88, %c8_i32_177 : i32
      %297 = arith.addi %0, %296 : i32
      %298 = arith.index_cast %297 : i32 to index
      %299 = memref.load %arg1[%298] : memref<16xi32, #tpu.memory_space<smem>>
      %c0_i32_178 = arith.constant 0 : i32
      %c31_i32_179 = arith.constant 31 : i32
      %300 = arith.maxsi %c0_i32_178, %299 : i32
      %301 = arith.minsi %c31_i32_179, %300 : i32
      %c16_i32_180 = arith.constant 16 : i32
      %c0_i32_181 = arith.constant 0 : i32
      %302 = arith.cmpi eq, %c16_i32_180, %c0_i32_181 : i32
      %c1_i32_182 = arith.constant 1 : i32
      %303 = arith.select %302, %c1_i32_182, %c16_i32_180 : i32
      %304 = arith.remsi %296, %303 : i32
      %c0_i32_183 = arith.constant 0 : i32
      %305 = arith.cmpi ne, %304, %c0_i32_183 : i32
      %c0_i32_184 = arith.constant 0 : i32
      %306 = arith.cmpi slt, %304, %c0_i32_184 : i32
      %c0_i32_185 = arith.constant 0 : i32
      %307 = arith.cmpi slt, %303, %c0_i32_185 : i32
      %308 = arith.xori %306, %307 : i1
      %309 = arith.andi %308, %305 : i1
      %310 = arith.addi %304, %303 : i32
      %311 = arith.select %309, %310, %304 : i32
      %c0_i32_186 = arith.constant 0 : i32
      %312 = tpu.memref_slice %arg2[%301, %c0_i32_186] : memref<32x128xf32, #tpu.memory_space<any>> -> memref<1x128xf32, #tpu.memory_space<any>>
      %c0_i32_187 = arith.constant 0 : i32
      %313 = tpu.memref_slice %arg7[%296, %c0_i32_187] : memref<8x128xf32, #tpu.memory_space<vmem>> -> memref<1x128xf32, #tpu.memory_space<vmem>>
      %314 = tpu.memref_slice %arg8[%311] : memref<16x!tpu.dma_semaphore, #tpu.memory_space<semaphore_mem>> -> memref<1x!tpu.dma_semaphore, #tpu.memory_space<semaphore_mem>>
      %315 = tpu.memref_squeeze %314 : memref<1x!tpu.dma_semaphore, #tpu.memory_space<semaphore_mem>> -> memref<!tpu.dma_semaphore, #tpu.memory_space<semaphore_mem>>
      tpu.enqueue_dma source(%312 : memref<1x128xf32, #tpu.memory_space<any>>) target(%313 : memref<1x128xf32, #tpu.memory_space<vmem>>) target_semaphore(%315 : memref<!tpu.dma_semaphore, #tpu.memory_space<semaphore_mem>>)
    } else {
    }
    %159 = arith.addi %0, %c2_i32_88 : i32
    %160 = arith.index_cast %159 : i32 to index
    %161 = memref.load %arg1[%160] : memref<16xi32, #tpu.memory_space<smem>>
    %c0_i32_92 = arith.constant 0 : i32
    %c31_i32_93 = arith.constant 31 : i32
    %162 = arith.maxsi %c0_i32_92, %161 : i32
    %163 = arith.minsi %c31_i32_93, %162 : i32
    %c16_i32_94 = arith.constant 16 : i32
    %c0_i32_95 = arith.constant 0 : i32
    %164 = arith.cmpi eq, %c16_i32_94, %c0_i32_95 : i32
    %c1_i32_96 = arith.constant 1 : i32
    %165 = arith.select %164, %c1_i32_96, %c16_i32_94 : i32
    %166 = arith.remsi %c2_i32_88, %165 : i32
    %c0_i32_97 = arith.constant 0 : i32
    %167 = arith.cmpi ne, %166, %c0_i32_97 : i32
    %c0_i32_98 = arith.constant 0 : i32
    %168 = arith.cmpi slt, %166, %c0_i32_98 : i32
    %c0_i32_99 = arith.constant 0 : i32
    %169 = arith.cmpi slt, %165, %c0_i32_99 : i32
    %170 = arith.xori %168, %169 : i1
    %171 = arith.andi %170, %167 : i1
    %172 = arith.addi %166, %165 : i32
    %173 = arith.select %171, %172, %166 : i32
    %c0_i32_100 = arith.constant 0 : i32
    %174 = tpu.memref_slice %arg2[%163, %c0_i32_100] : memref<32x128xf32, #tpu.memory_space<any>> -> memref<1x128xf32, #tpu.memory_space<any>>
    %c0_i32_101 = arith.constant 0 : i32
    %175 = tpu.memref_slice %arg7[%c2_i32_88, %c0_i32_101] : memref<8x128xf32, #tpu.memory_space<vmem>> -> memref<1x128xf32, #tpu.memory_space<vmem>>
    %176 = tpu.memref_slice %arg8[%173] : memref<16x!tpu.dma_semaphore, #tpu.memory_space<semaphore_mem>> -> memref<1x!tpu.dma_semaphore, #tpu.memory_space<semaphore_mem>>
    %177 = tpu.memref_squeeze %176 : memref<1x!tpu.dma_semaphore, #tpu.memory_space<semaphore_mem>> -> memref<!tpu.dma_semaphore, #tpu.memory_space<semaphore_mem>>
    tpu.wait_dma2 semaphore(%177 : memref<!tpu.dma_semaphore, #tpu.memory_space<semaphore_mem>>) src(%174 : memref<1x128xf32, #tpu.memory_space<any>>) dst(%175 : memref<1x128xf32, #tpu.memory_space<vmem>>)
    %c3_i32_102 = arith.constant 3 : i32
    %c8_i32_103 = arith.constant 8 : i32
    %178 = arith.addi %c3_i32_102, %c8_i32_103 : i32
    %c8_i32_104 = arith.constant 8 : i32
    %179 = arith.cmpi slt, %178, %c8_i32_104 : i32
    %180 = arith.extui %179 : i1 to i32
    %c0_i32_105 = arith.constant 0 : i32
    %181 = arith.cmpi ne, %180, %c0_i32_105 : i32
    scf.if %181 {
      %c8_i32_177 = arith.constant 8 : i32
      %296 = arith.addi %c3_i32_102, %c8_i32_177 : i32
      %297 = arith.addi %0, %296 : i32
      %298 = arith.index_cast %297 : i32 to index
      %299 = memref.load %arg1[%298] : memref<16xi32, #tpu.memory_space<smem>>
      %c0_i32_178 = arith.constant 0 : i32
      %c31_i32_179 = arith.constant 31 : i32
      %300 = arith.maxsi %c0_i32_178, %299 : i32
      %301 = arith.minsi %c31_i32_179, %300 : i32
      %c16_i32_180 = arith.constant 16 : i32
      %c0_i32_181 = arith.constant 0 : i32
      %302 = arith.cmpi eq, %c16_i32_180, %c0_i32_181 : i32
      %c1_i32_182 = arith.constant 1 : i32
      %303 = arith.select %302, %c1_i32_182, %c16_i32_180 : i32
      %304 = arith.remsi %296, %303 : i32
      %c0_i32_183 = arith.constant 0 : i32
      %305 = arith.cmpi ne, %304, %c0_i32_183 : i32
      %c0_i32_184 = arith.constant 0 : i32
      %306 = arith.cmpi slt, %304, %c0_i32_184 : i32
      %c0_i32_185 = arith.constant 0 : i32
      %307 = arith.cmpi slt, %303, %c0_i32_185 : i32
      %308 = arith.xori %306, %307 : i1
      %309 = arith.andi %308, %305 : i1
      %310 = arith.addi %304, %303 : i32
      %311 = arith.select %309, %310, %304 : i32
      %c0_i32_186 = arith.constant 0 : i32
      %312 = tpu.memref_slice %arg2[%301, %c0_i32_186] : memref<32x128xf32, #tpu.memory_space<any>> -> memref<1x128xf32, #tpu.memory_space<any>>
      %c0_i32_187 = arith.constant 0 : i32
      %313 = tpu.memref_slice %arg7[%296, %c0_i32_187] : memref<8x128xf32, #tpu.memory_space<vmem>> -> memref<1x128xf32, #tpu.memory_space<vmem>>
      %314 = tpu.memref_slice %arg8[%311] : memref<16x!tpu.dma_semaphore, #tpu.memory_space<semaphore_mem>> -> memref<1x!tpu.dma_semaphore, #tpu.memory_space<semaphore_mem>>
      %315 = tpu.memref_squeeze %314 : memref<1x!tpu.dma_semaphore, #tpu.memory_space<semaphore_mem>> -> memref<!tpu.dma_semaphore, #tpu.memory_space<semaphore_mem>>
      tpu.enqueue_dma source(%312 : memref<1x128xf32, #tpu.memory_space<any>>) target(%313 : memref<1x128xf32, #tpu.memory_space<vmem>>) target_semaphore(%315 : memref<!tpu.dma_semaphore, #tpu.memory_space<semaphore_mem>>)
    } else {
    }
    %182 = arith.addi %0, %c3_i32_102 : i32
    %183 = arith.index_cast %182 : i32 to index
    %184 = memref.load %arg1[%183] : memref<16xi32, #tpu.memory_space<smem>>
    %c0_i32_106 = arith.constant 0 : i32
    %c31_i32_107 = arith.constant 31 : i32
    %185 = arith.maxsi %c0_i32_106, %184 : i32
    %186 = arith.minsi %c31_i32_107, %185 : i32
    %c16_i32_108 = arith.constant 16 : i32
    %c0_i32_109 = arith.constant 0 : i32
    %187 = arith.cmpi eq, %c16_i32_108, %c0_i32_109 : i32
    %c1_i32_110 = arith.constant 1 : i32
    %188 = arith.select %187, %c1_i32_110, %c16_i32_108 : i32
    %189 = arith.remsi %c3_i32_102, %188 : i32
    %c0_i32_111 = arith.constant 0 : i32
    %190 = arith.cmpi ne, %189, %c0_i32_111 : i32
    %c0_i32_112 = arith.constant 0 : i32
    %191 = arith.cmpi slt, %189, %c0_i32_112 : i32
    %c0_i32_113 = arith.constant 0 : i32
    %192 = arith.cmpi slt, %188, %c0_i32_113 : i32
    %193 = arith.xori %191, %192 : i1
    %194 = arith.andi %193, %190 : i1
    %195 = arith.addi %189, %188 : i32
    %196 = arith.select %194, %195, %189 : i32
    %c0_i32_114 = arith.constant 0 : i32
    %197 = tpu.memref_slice %arg2[%186, %c0_i32_114] : memref<32x128xf32, #tpu.memory_space<any>> -> memref<1x128xf32, #tpu.memory_space<any>>
    %c0_i32_115 = arith.constant 0 : i32
    %198 = tpu.memref_slice %arg7[%c3_i32_102, %c0_i32_115] : memref<8x128xf32, #tpu.memory_space<vmem>> -> memref<1x128xf32, #tpu.memory_space<vmem>>
    %199 = tpu.memref_slice %arg8[%196] : memref<16x!tpu.dma_semaphore, #tpu.memory_space<semaphore_mem>> -> memref<1x!tpu.dma_semaphore, #tpu.memory_space<semaphore_mem>>
    %200 = tpu.memref_squeeze %199 : memref<1x!tpu.dma_semaphore, #tpu.memory_space<semaphore_mem>> -> memref<!tpu.dma_semaphore, #tpu.memory_space<semaphore_mem>>
    tpu.wait_dma2 semaphore(%200 : memref<!tpu.dma_semaphore, #tpu.memory_space<semaphore_mem>>) src(%197 : memref<1x128xf32, #tpu.memory_space<any>>) dst(%198 : memref<1x128xf32, #tpu.memory_space<vmem>>)
    %c4_i32_116 = arith.constant 4 : i32
    %c8_i32_117 = arith.constant 8 : i32
    %201 = arith.addi %c4_i32_116, %c8_i32_117 : i32
    %c8_i32_118 = arith.constant 8 : i32
    %202 = arith.cmpi slt, %201, %c8_i32_118 : i32
    %203 = arith.extui %202 : i1 to i32
    %c0_i32_119 = arith.constant 0 : i32
    %204 = arith.cmpi ne, %203, %c0_i32_119 : i32
    scf.if %204 {
      %c8_i32_177 = arith.constant 8 : i32
      %296 = arith.addi %c4_i32_116, %c8_i32_177 : i32
      %297 = arith.addi %0, %296 : i32
      %298 = arith.index_cast %297 : i32 to index
      %299 = memref.load %arg1[%298] : memref<16xi32, #tpu.memory_space<smem>>
      %c0_i32_178 = arith.constant 0 : i32
      %c31_i32_179 = arith.constant 31 : i32
      %300 = arith.maxsi %c0_i32_178, %299 : i32
      %301 = arith.minsi %c31_i32_179, %300 : i32
      %c16_i32_180 = arith.constant 16 : i32
      %c0_i32_181 = arith.constant 0 : i32
      %302 = arith.cmpi eq, %c16_i32_180, %c0_i32_181 : i32
      %c1_i32_182 = arith.constant 1 : i32
      %303 = arith.select %302, %c1_i32_182, %c16_i32_180 : i32
      %304 = arith.remsi %296, %303 : i32
      %c0_i32_183 = arith.constant 0 : i32
      %305 = arith.cmpi ne, %304, %c0_i32_183 : i32
      %c0_i32_184 = arith.constant 0 : i32
      %306 = arith.cmpi slt, %304, %c0_i32_184 : i32
      %c0_i32_185 = arith.constant 0 : i32
      %307 = arith.cmpi slt, %303, %c0_i32_185 : i32
      %308 = arith.xori %306, %307 : i1
      %309 = arith.andi %308, %305 : i1
      %310 = arith.addi %304, %303 : i32
      %311 = arith.select %309, %310, %304 : i32
      %c0_i32_186 = arith.constant 0 : i32
      %312 = tpu.memref_slice %arg2[%301, %c0_i32_186] : memref<32x128xf32, #tpu.memory_space<any>> -> memref<1x128xf32, #tpu.memory_space<any>>
      %c0_i32_187 = arith.constant 0 : i32
      %313 = tpu.memref_slice %arg7[%296, %c0_i32_187] : memref<8x128xf32, #tpu.memory_space<vmem>> -> memref<1x128xf32, #tpu.memory_space<vmem>>
      %314 = tpu.memref_slice %arg8[%311] : memref<16x!tpu.dma_semaphore, #tpu.memory_space<semaphore_mem>> -> memref<1x!tpu.dma_semaphore, #tpu.memory_space<semaphore_mem>>
      %315 = tpu.memref_squeeze %314 : memref<1x!tpu.dma_semaphore, #tpu.memory_space<semaphore_mem>> -> memref<!tpu.dma_semaphore, #tpu.memory_space<semaphore_mem>>
      tpu.enqueue_dma source(%312 : memref<1x128xf32, #tpu.memory_space<any>>) target(%313 : memref<1x128xf32, #tpu.memory_space<vmem>>) target_semaphore(%315 : memref<!tpu.dma_semaphore, #tpu.memory_space<semaphore_mem>>)
    } else {
    }
    %205 = arith.addi %0, %c4_i32_116 : i32
    %206 = arith.index_cast %205 : i32 to index
    %207 = memref.load %arg1[%206] : memref<16xi32, #tpu.memory_space<smem>>
    %c0_i32_120 = arith.constant 0 : i32
    %c31_i32_121 = arith.constant 31 : i32
    %208 = arith.maxsi %c0_i32_120, %207 : i32
    %209 = arith.minsi %c31_i32_121, %208 : i32
    %c16_i32_122 = arith.constant 16 : i32
    %c0_i32_123 = arith.constant 0 : i32
    %210 = arith.cmpi eq, %c16_i32_122, %c0_i32_123 : i32
    %c1_i32_124 = arith.constant 1 : i32
    %211 = arith.select %210, %c1_i32_124, %c16_i32_122 : i32
    %212 = arith.remsi %c4_i32_116, %211 : i32
    %c0_i32_125 = arith.constant 0 : i32
    %213 = arith.cmpi ne, %212, %c0_i32_125 : i32
    %c0_i32_126 = arith.constant 0 : i32
    %214 = arith.cmpi slt, %212, %c0_i32_126 : i32
    %c0_i32_127 = arith.constant 0 : i32
    %215 = arith.cmpi slt, %211, %c0_i32_127 : i32
    %216 = arith.xori %214, %215 : i1
    %217 = arith.andi %216, %213 : i1
    %218 = arith.addi %212, %211 : i32
    %219 = arith.select %217, %218, %212 : i32
    %c0_i32_128 = arith.constant 0 : i32
    %220 = tpu.memref_slice %arg2[%209, %c0_i32_128] : memref<32x128xf32, #tpu.memory_space<any>> -> memref<1x128xf32, #tpu.memory_space<any>>
    %c0_i32_129 = arith.constant 0 : i32
    %221 = tpu.memref_slice %arg7[%c4_i32_116, %c0_i32_129] : memref<8x128xf32, #tpu.memory_space<vmem>> -> memref<1x128xf32, #tpu.memory_space<vmem>>
    %222 = tpu.memref_slice %arg8[%219] : memref<16x!tpu.dma_semaphore, #tpu.memory_space<semaphore_mem>> -> memref<1x!tpu.dma_semaphore, #tpu.memory_space<semaphore_mem>>
    %223 = tpu.memref_squeeze %222 : memref<1x!tpu.dma_semaphore, #tpu.memory_space<semaphore_mem>> -> memref<!tpu.dma_semaphore, #tpu.memory_space<semaphore_mem>>
    tpu.wait_dma2 semaphore(%223 : memref<!tpu.dma_semaphore, #tpu.memory_space<semaphore_mem>>) src(%220 : memref<1x128xf32, #tpu.memory_space<any>>) dst(%221 : memref<1x128xf32, #tpu.memory_space<vmem>>)
    %c5_i32_130 = arith.constant 5 : i32
    %c8_i32_131 = arith.constant 8 : i32
    %224 = arith.addi %c5_i32_130, %c8_i32_131 : i32
    %c8_i32_132 = arith.constant 8 : i32
    %225 = arith.cmpi slt, %224, %c8_i32_132 : i32
    %226 = arith.extui %225 : i1 to i32
    %c0_i32_133 = arith.constant 0 : i32
    %227 = arith.cmpi ne, %226, %c0_i32_133 : i32
    scf.if %227 {
      %c8_i32_177 = arith.constant 8 : i32
      %296 = arith.addi %c5_i32_130, %c8_i32_177 : i32
      %297 = arith.addi %0, %296 : i32
      %298 = arith.index_cast %297 : i32 to index
      %299 = memref.load %arg1[%298] : memref<16xi32, #tpu.memory_space<smem>>
      %c0_i32_178 = arith.constant 0 : i32
      %c31_i32_179 = arith.constant 31 : i32
      %300 = arith.maxsi %c0_i32_178, %299 : i32
      %301 = arith.minsi %c31_i32_179, %300 : i32
      %c16_i32_180 = arith.constant 16 : i32
      %c0_i32_181 = arith.constant 0 : i32
      %302 = arith.cmpi eq, %c16_i32_180, %c0_i32_181 : i32
      %c1_i32_182 = arith.constant 1 : i32
      %303 = arith.select %302, %c1_i32_182, %c16_i32_180 : i32
      %304 = arith.remsi %296, %303 : i32
      %c0_i32_183 = arith.constant 0 : i32
      %305 = arith.cmpi ne, %304, %c0_i32_183 : i32
      %c0_i32_184 = arith.constant 0 : i32
      %306 = arith.cmpi slt, %304, %c0_i32_184 : i32
      %c0_i32_185 = arith.constant 0 : i32
      %307 = arith.cmpi slt, %303, %c0_i32_185 : i32
      %308 = arith.xori %306, %307 : i1
      %309 = arith.andi %308, %305 : i1
      %310 = arith.addi %304, %303 : i32
      %311 = arith.select %309, %310, %304 : i32
      %c0_i32_186 = arith.constant 0 : i32
      %312 = tpu.memref_slice %arg2[%301, %c0_i32_186] : memref<32x128xf32, #tpu.memory_space<any>> -> memref<1x128xf32, #tpu.memory_space<any>>
      %c0_i32_187 = arith.constant 0 : i32
      %313 = tpu.memref_slice %arg7[%296, %c0_i32_187] : memref<8x128xf32, #tpu.memory_space<vmem>> -> memref<1x128xf32, #tpu.memory_space<vmem>>
      %314 = tpu.memref_slice %arg8[%311] : memref<16x!tpu.dma_semaphore, #tpu.memory_space<semaphore_mem>> -> memref<1x!tpu.dma_semaphore, #tpu.memory_space<semaphore_mem>>
      %315 = tpu.memref_squeeze %314 : memref<1x!tpu.dma_semaphore, #tpu.memory_space<semaphore_mem>> -> memref<!tpu.dma_semaphore, #tpu.memory_space<semaphore_mem>>
      tpu.enqueue_dma source(%312 : memref<1x128xf32, #tpu.memory_space<any>>) target(%313 : memref<1x128xf32, #tpu.memory_space<vmem>>) target_semaphore(%315 : memref<!tpu.dma_semaphore, #tpu.memory_space<semaphore_mem>>)
    } else {
    }
    %228 = arith.addi %0, %c5_i32_130 : i32
    %229 = arith.index_cast %228 : i32 to index
    %230 = memref.load %arg1[%229] : memref<16xi32, #tpu.memory_space<smem>>
    %c0_i32_134 = arith.constant 0 : i32
    %c31_i32_135 = arith.constant 31 : i32
    %231 = arith.maxsi %c0_i32_134, %230 : i32
    %232 = arith.minsi %c31_i32_135, %231 : i32
    %c16_i32_136 = arith.constant 16 : i32
    %c0_i32_137 = arith.constant 0 : i32
    %233 = arith.cmpi eq, %c16_i32_136, %c0_i32_137 : i32
    %c1_i32_138 = arith.constant 1 : i32
    %234 = arith.select %233, %c1_i32_138, %c16_i32_136 : i32
    %235 = arith.remsi %c5_i32_130, %234 : i32
    %c0_i32_139 = arith.constant 0 : i32
    %236 = arith.cmpi ne, %235, %c0_i32_139 : i32
    %c0_i32_140 = arith.constant 0 : i32
    %237 = arith.cmpi slt, %235, %c0_i32_140 : i32
    %c0_i32_141 = arith.constant 0 : i32
    %238 = arith.cmpi slt, %234, %c0_i32_141 : i32
    %239 = arith.xori %237, %238 : i1
    %240 = arith.andi %239, %236 : i1
    %241 = arith.addi %235, %234 : i32
    %242 = arith.select %240, %241, %235 : i32
    %c0_i32_142 = arith.constant 0 : i32
    %243 = tpu.memref_slice %arg2[%232, %c0_i32_142] : memref<32x128xf32, #tpu.memory_space<any>> -> memref<1x128xf32, #tpu.memory_space<any>>
    %c0_i32_143 = arith.constant 0 : i32
    %244 = tpu.memref_slice %arg7[%c5_i32_130, %c0_i32_143] : memref<8x128xf32, #tpu.memory_space<vmem>> -> memref<1x128xf32, #tpu.memory_space<vmem>>
    %245 = tpu.memref_slice %arg8[%242] : memref<16x!tpu.dma_semaphore, #tpu.memory_space<semaphore_mem>> -> memref<1x!tpu.dma_semaphore, #tpu.memory_space<semaphore_mem>>
    %246 = tpu.memref_squeeze %245 : memref<1x!tpu.dma_semaphore, #tpu.memory_space<semaphore_mem>> -> memref<!tpu.dma_semaphore, #tpu.memory_space<semaphore_mem>>
    tpu.wait_dma2 semaphore(%246 : memref<!tpu.dma_semaphore, #tpu.memory_space<semaphore_mem>>) src(%243 : memref<1x128xf32, #tpu.memory_space<any>>) dst(%244 : memref<1x128xf32, #tpu.memory_space<vmem>>)
    %c6_i32_144 = arith.constant 6 : i32
    %c8_i32_145 = arith.constant 8 : i32
    %247 = arith.addi %c6_i32_144, %c8_i32_145 : i32
    %c8_i32_146 = arith.constant 8 : i32
    %248 = arith.cmpi slt, %247, %c8_i32_146 : i32
    %249 = arith.extui %248 : i1 to i32
    %c0_i32_147 = arith.constant 0 : i32
    %250 = arith.cmpi ne, %249, %c0_i32_147 : i32
    scf.if %250 {
      %c8_i32_177 = arith.constant 8 : i32
      %296 = arith.addi %c6_i32_144, %c8_i32_177 : i32
      %297 = arith.addi %0, %296 : i32
      %298 = arith.index_cast %297 : i32 to index
      %299 = memref.load %arg1[%298] : memref<16xi32, #tpu.memory_space<smem>>
      %c0_i32_178 = arith.constant 0 : i32
      %c31_i32_179 = arith.constant 31 : i32
      %300 = arith.maxsi %c0_i32_178, %299 : i32
      %301 = arith.minsi %c31_i32_179, %300 : i32
      %c16_i32_180 = arith.constant 16 : i32
      %c0_i32_181 = arith.constant 0 : i32
      %302 = arith.cmpi eq, %c16_i32_180, %c0_i32_181 : i32
      %c1_i32_182 = arith.constant 1 : i32
      %303 = arith.select %302, %c1_i32_182, %c16_i32_180 : i32
      %304 = arith.remsi %296, %303 : i32
      %c0_i32_183 = arith.constant 0 : i32
      %305 = arith.cmpi ne, %304, %c0_i32_183 : i32
      %c0_i32_184 = arith.constant 0 : i32
      %306 = arith.cmpi slt, %304, %c0_i32_184 : i32
      %c0_i32_185 = arith.constant 0 : i32
      %307 = arith.cmpi slt, %303, %c0_i32_185 : i32
      %308 = arith.xori %306, %307 : i1
      %309 = arith.andi %308, %305 : i1
      %310 = arith.addi %304, %303 : i32
      %311 = arith.select %309, %310, %304 : i32
      %c0_i32_186 = arith.constant 0 : i32
      %312 = tpu.memref_slice %arg2[%301, %c0_i32_186] : memref<32x128xf32, #tpu.memory_space<any>> -> memref<1x128xf32, #tpu.memory_space<any>>
      %c0_i32_187 = arith.constant 0 : i32
      %313 = tpu.memref_slice %arg7[%296, %c0_i32_187] : memref<8x128xf32, #tpu.memory_space<vmem>> -> memref<1x128xf32, #tpu.memory_space<vmem>>
      %314 = tpu.memref_slice %arg8[%311] : memref<16x!tpu.dma_semaphore, #tpu.memory_space<semaphore_mem>> -> memref<1x!tpu.dma_semaphore, #tpu.memory_space<semaphore_mem>>
      %315 = tpu.memref_squeeze %314 : memref<1x!tpu.dma_semaphore, #tpu.memory_space<semaphore_mem>> -> memref<!tpu.dma_semaphore, #tpu.memory_space<semaphore_mem>>
      tpu.enqueue_dma source(%312 : memref<1x128xf32, #tpu.memory_space<any>>) target(%313 : memref<1x128xf32, #tpu.memory_space<vmem>>) target_semaphore(%315 : memref<!tpu.dma_semaphore, #tpu.memory_space<semaphore_mem>>)
    } else {
    }
    %251 = arith.addi %0, %c6_i32_144 : i32
    %252 = arith.index_cast %251 : i32 to index
    %253 = memref.load %arg1[%252] : memref<16xi32, #tpu.memory_space<smem>>
    %c0_i32_148 = arith.constant 0 : i32
    %c31_i32_149 = arith.constant 31 : i32
    %254 = arith.maxsi %c0_i32_148, %253 : i32
    %255 = arith.minsi %c31_i32_149, %254 : i32
    %c16_i32_150 = arith.constant 16 : i32
    %c0_i32_151 = arith.constant 0 : i32
    %256 = arith.cmpi eq, %c16_i32_150, %c0_i32_151 : i32
    %c1_i32_152 = arith.constant 1 : i32
    %257 = arith.select %256, %c1_i32_152, %c16_i32_150 : i32
    %258 = arith.remsi %c6_i32_144, %257 : i32
    %c0_i32_153 = arith.constant 0 : i32
    %259 = arith.cmpi ne, %258, %c0_i32_153 : i32
    %c0_i32_154 = arith.constant 0 : i32
    %260 = arith.cmpi slt, %258, %c0_i32_154 : i32
    %c0_i32_155 = arith.constant 0 : i32
    %261 = arith.cmpi slt, %257, %c0_i32_155 : i32
    %262 = arith.xori %260, %261 : i1
    %263 = arith.andi %262, %259 : i1
    %264 = arith.addi %258, %257 : i32
    %265 = arith.select %263, %264, %258 : i32
    %c0_i32_156 = arith.constant 0 : i32
    %266 = tpu.memref_slice %arg2[%255, %c0_i32_156] : memref<32x128xf32, #tpu.memory_space<any>> -> memref<1x128xf32, #tpu.memory_space<any>>
    %c0_i32_157 = arith.constant 0 : i32
    %267 = tpu.memref_slice %arg7[%c6_i32_144, %c0_i32_157] : memref<8x128xf32, #tpu.memory_space<vmem>> -> memref<1x128xf32, #tpu.memory_space<vmem>>
    %268 = tpu.memref_slice %arg8[%265] : memref<16x!tpu.dma_semaphore, #tpu.memory_space<semaphore_mem>> -> memref<1x!tpu.dma_semaphore, #tpu.memory_space<semaphore_mem>>
    %269 = tpu.memref_squeeze %268 : memref<1x!tpu.dma_semaphore, #tpu.memory_space<semaphore_mem>> -> memref<!tpu.dma_semaphore, #tpu.memory_space<semaphore_mem>>
    tpu.wait_dma2 semaphore(%269 : memref<!tpu.dma_semaphore, #tpu.memory_space<semaphore_mem>>) src(%266 : memref<1x128xf32, #tpu.memory_space<any>>) dst(%267 : memref<1x128xf32, #tpu.memory_space<vmem>>)
    %c7_i32_158 = arith.constant 7 : i32
    %c8_i32_159 = arith.constant 8 : i32
    %270 = arith.addi %c7_i32_158, %c8_i32_159 : i32
    %c8_i32_160 = arith.constant 8 : i32
    %271 = arith.cmpi slt, %270, %c8_i32_160 : i32
    %272 = arith.extui %271 : i1 to i32
    %c0_i32_161 = arith.constant 0 : i32
    %273 = arith.cmpi ne, %272, %c0_i32_161 : i32
    scf.if %273 {
      %c8_i32_177 = arith.constant 8 : i32
      %296 = arith.addi %c7_i32_158, %c8_i32_177 : i32
      %297 = arith.addi %0, %296 : i32
      %298 = arith.index_cast %297 : i32 to index
      %299 = memref.load %arg1[%298] : memref<16xi32, #tpu.memory_space<smem>>
      %c0_i32_178 = arith.constant 0 : i32
      %c31_i32_179 = arith.constant 31 : i32
      %300 = arith.maxsi %c0_i32_178, %299 : i32
      %301 = arith.minsi %c31_i32_179, %300 : i32
      %c16_i32_180 = arith.constant 16 : i32
      %c0_i32_181 = arith.constant 0 : i32
      %302 = arith.cmpi eq, %c16_i32_180, %c0_i32_181 : i32
      %c1_i32_182 = arith.constant 1 : i32
      %303 = arith.select %302, %c1_i32_182, %c16_i32_180 : i32
      %304 = arith.remsi %296, %303 : i32
      %c0_i32_183 = arith.constant 0 : i32
      %305 = arith.cmpi ne, %304, %c0_i32_183 : i32
      %c0_i32_184 = arith.constant 0 : i32
      %306 = arith.cmpi slt, %304, %c0_i32_184 : i32
      %c0_i32_185 = arith.constant 0 : i32
      %307 = arith.cmpi slt, %303, %c0_i32_185 : i32
      %308 = arith.xori %306, %307 : i1
      %309 = arith.andi %308, %305 : i1
      %310 = arith.addi %304, %303 : i32
      %311 = arith.select %309, %310, %304 : i32
      %c0_i32_186 = arith.constant 0 : i32
      %312 = tpu.memref_slice %arg2[%301, %c0_i32_186] : memref<32x128xf32, #tpu.memory_space<any>> -> memref<1x128xf32, #tpu.memory_space<any>>
      %c0_i32_187 = arith.constant 0 : i32
      %313 = tpu.memref_slice %arg7[%296, %c0_i32_187] : memref<8x128xf32, #tpu.memory_space<vmem>> -> memref<1x128xf32, #tpu.memory_space<vmem>>
      %314 = tpu.memref_slice %arg8[%311] : memref<16x!tpu.dma_semaphore, #tpu.memory_space<semaphore_mem>> -> memref<1x!tpu.dma_semaphore, #tpu.memory_space<semaphore_mem>>
      %315 = tpu.memref_squeeze %314 : memref<1x!tpu.dma_semaphore, #tpu.memory_space<semaphore_mem>> -> memref<!tpu.dma_semaphore, #tpu.memory_space<semaphore_mem>>
      tpu.enqueue_dma source(%312 : memref<1x128xf32, #tpu.memory_space<any>>) target(%313 : memref<1x128xf32, #tpu.memory_space<vmem>>) target_semaphore(%315 : memref<!tpu.dma_semaphore, #tpu.memory_space<semaphore_mem>>)
    } else {
    }
    %274 = arith.addi %0, %c7_i32_158 : i32
    %275 = arith.index_cast %274 : i32 to index
    %276 = memref.load %arg1[%275] : memref<16xi32, #tpu.memory_space<smem>>
    %c0_i32_162 = arith.constant 0 : i32
    %c31_i32_163 = arith.constant 31 : i32
    %277 = arith.maxsi %c0_i32_162, %276 : i32
    %278 = arith.minsi %c31_i32_163, %277 : i32
    %c16_i32_164 = arith.constant 16 : i32
    %c0_i32_165 = arith.constant 0 : i32
    %279 = arith.cmpi eq, %c16_i32_164, %c0_i32_165 : i32
    %c1_i32_166 = arith.constant 1 : i32
    %280 = arith.select %279, %c1_i32_166, %c16_i32_164 : i32
    %281 = arith.remsi %c7_i32_158, %280 : i32
    %c0_i32_167 = arith.constant 0 : i32
    %282 = arith.cmpi ne, %281, %c0_i32_167 : i32
    %c0_i32_168 = arith.constant 0 : i32
    %283 = arith.cmpi slt, %281, %c0_i32_168 : i32
    %c0_i32_169 = arith.constant 0 : i32
    %284 = arith.cmpi slt, %280, %c0_i32_169 : i32
    %285 = arith.xori %283, %284 : i1
    %286 = arith.andi %285, %282 : i1
    %287 = arith.addi %281, %280 : i32
    %288 = arith.select %286, %287, %281 : i32
    %c0_i32_170 = arith.constant 0 : i32
    %289 = tpu.memref_slice %arg2[%278, %c0_i32_170] : memref<32x128xf32, #tpu.memory_space<any>> -> memref<1x128xf32, #tpu.memory_space<any>>
    %c0_i32_171 = arith.constant 0 : i32
    %290 = tpu.memref_slice %arg7[%c7_i32_158, %c0_i32_171] : memref<8x128xf32, #tpu.memory_space<vmem>> -> memref<1x128xf32, #tpu.memory_space<vmem>>
    %291 = tpu.memref_slice %arg8[%288] : memref<16x!tpu.dma_semaphore, #tpu.memory_space<semaphore_mem>> -> memref<1x!tpu.dma_semaphore, #tpu.memory_space<semaphore_mem>>
    %292 = tpu.memref_squeeze %291 : memref<1x!tpu.dma_semaphore, #tpu.memory_space<semaphore_mem>> -> memref<!tpu.dma_semaphore, #tpu.memory_space<semaphore_mem>>
    tpu.wait_dma2 semaphore(%292 : memref<!tpu.dma_semaphore, #tpu.memory_space<semaphore_mem>>) src(%289 : memref<1x128xf32, #tpu.memory_space<any>>) dst(%290 : memref<1x128xf32, #tpu.memory_space<vmem>>)
    %c8_i32_172 = arith.constant 8 : i32
    %c0_173 = arith.constant 0 : index
    %c0_174 = arith.constant 0 : index
    %293 = vector.load %arg7[%c0_173, %c0_174] : memref<8x128xf32, #tpu.memory_space<vmem>>, vector<8x128xf32>
    %294 = arith.addf %293, %108 : vector<8x128xf32>
    %c0_175 = arith.constant 0 : index
    %c0_176 = arith.constant 0 : index
    %295 = vector.load %arg6[%c0_175, %c0_176] : memref<8x128xf32, #tpu.memory_space<vmem>>, vector<8x128xf32>
    tpu.vector_store %arg6[%c0_175, %c0_176], %294 {strides = array<i32>} : memref<8x128xf32, #tpu.memory_space<vmem>>, vector<8x128xf32>,
    return
  }
  func.func @transform_1(%arg0: i32, %arg1: memref<16xi32, #tpu.memory_space<smem>>) -> (i32, i32) {
    %c0_i32 = arith.constant 0 : i32
    %c0_i32_0 = arith.constant 0 : i32
    return %arg0, %c0_i32 : i32, i32
  }
  func.func @transform_2(%arg0: i32, %arg1: memref<16xi32, #tpu.memory_space<smem>>) -> (i32, i32) {
    %c0_i32 = arith.constant 0 : i32
    %c0_i32_0 = arith.constant 0 : i32
    %c0_i32_1 = arith.constant 0 : i32
    return %c0_i32, %c0_i32_0 : i32, i32
  }
  func.func @transform_3(%arg0: i32, %arg1: memref<16xi32, #tpu.memory_space<smem>>) -> (i32, i32) {
    %c0_i32 = arith.constant 0 : i32
    %c0_i32_0 = arith.constant 0 : i32
    %c0_i32_1 = arith.constant 0 : i32
    return %c0_i32, %c0_i32_0 : i32, i32
  }
  func.func @transform_4(%arg0: i32, %arg1: memref<16xi32, #tpu.memory_space<smem>>) -> (i32, i32) {
    %c0_i32 = arith.constant 0 : i32
    %c0_i32_0 = arith.constant 0 : i32
    return %arg0, %c0_i32 : i32, i32
  }
}

</mosaic_0001>

<bundles_post_ra>
// kernel: tpu_custom_call.1
= control target key start
LH: loop header
LB: loop body
LE: loop exit
PB: predicated region body
PF: predicated region fallthrough
CT: control target
= control target key end

     0   :  { %s1012_s21 = smov [#allocation5]   ;;  %s1276_s0 = inlined_call_operand.vmem [shape: s32[16], index: 0, kind: input, shape index: {}]   ;;  %s1277_s1 = inlined_call_operand.hbm [shape: f32[32,128], index: 1, kind: input, shape index: {}]   ;;  %s1278_s2 = inlined_call_operand.vmem [shape: s32[16,1], index: 2, kind: input, shape index: {}]   ;;  %s1279_s3 = inlined_call_operand.vmem [shape: f32[8,128], index: 3, kind: input, shape index: {}]   ;;  %s1280_s4 = inlined_call_operand.vmem [shape: f32[8,128], index: 4, kind: input, shape index: {}]   ;;  %s1281_s5 = inlined_call_operand.hbm [shape: f32[16,128], index: 5, kind: output, shape index: {}]  }
   0x1   :  { %1284 = sst [smem:[#allocation37_spill]] %s1278_s2  ;;  %s11_s20 = sshll.u32 %s1276_s0, 4  ;;  %s12_s20 = int_to_ptr.vmem [resolvable:$true] %s11_s20 }
   0x2   :  { %14 = dma.vmem_to_smem %s12_s20, 16, %s1012_s21, [#allocation4] }
   0x3   :  { %974 = dma.done.wait [#allocation4], 16 }
   0x4   :  { %975 = vsyncadd [#allocation4], 4294967280 }
   0x5   :  { %17 = sfence }
   0x6   :  { %18 = vsyncpa [#allocation7], 0 }
   0x7   :  { %20 = vsyncpa [#allocation7 + $0x1], 0  ;;  %s1055_s22 = smov 0   ;;  %s1057_s23 = smov 0  }
   0x8   :  { %s1059_s24 = smov 0   ;;  %s1061_s25 = smov 0  }
   0x9 LB: > { %s592_s0 = sadd.s32 4294967295, %s1010_s25   ;;  %s593_s26 = sadd.s32 4294967294, %s1010_s25   ;;  %s1010_s25 = sphi %s1061_s25, %s1296_s25   ;;  %s1006_s24 = sphi %s1059_s24, %s1295_s24   ;;  %s1002_s23 = sphi %s1057_s23, %s1294_s23   ;;  %s998_s22 = sphi %s1055_s22, %s1293_s22  }
   0xa   : > { %s1078_s27 = sadd.s32 1, %s1010_s25   ;;  %s101_s28 = sadd.s32 1, %s1006_s24 }
   0xb   : > { %s98_s29 = ssub.s32 %s1010_s25, %s1078_s27  ;;  %p111_p0 = scmp.ne.s32.totalorder %s1006_s24, %s1002_s23 }
   0xc   : > { %p99_p1 = scmp.eq.s32.totalorder %s98_s29, 0  ;;  %p112_p2 = scmp.eq.s32.totalorder %s592_s0, 1 }
   0xd   : > { %p117_p3 = scmp.ne.s32.totalorder %s1002_s23, %s998_s22  ;;  %p118_p4 = scmp.eq.s32.totalorder %s593_s26, 1 }
   0xe   : > { %s1088_s30 = scalar_select %p99_p1, %s1006_s24, %s101_s28  }
   0xf   : > { %p1090_p5 = por %p112_p2, %p111_p0  ;;  %p1094_p6 = por %p118_p4, %p117_p3 }
  0x10   : > { %p596_p7 = scmp.ge.s32.totalorder %s1010_s25, 1  ;;  %p149_p8 = scmp.lt.s32.totalorder %s1010_s25, 3 }
  0x12   : > { %p150_p9 = pnand %p596_p7, %p149_p8 }
  0x14   : > { %153 = sbr.rel (%p150_p9) target bundleno = 195 (0xc3), region = 32 }
  0x19   : > { %p172_p10 = scmp.lt.s32.totalorder %s592_s0, 1  ;;  %s1282_s8 = sand.u32 1, %s1002_s23   ;;  %v1013_v0 = vmov 0  }
  0x1a   : > { %725 = vset.pattern.permute.xlu0 %v1013_v0  ;;  %s1103_s9 = sshll.u32 %s1282_s8, 3  ;;  %s1105_s10 = sshll.u32 %s592_s0, 3 }
  0x1b   : > { %s1298_s0 = smov (!%p172_p10, %s592_s0), 1  ;;  %s177_s11 = sld [smem:[#allocation5 + %s1105_s10]] }
  0x1c   : > { %s598_s12 = sshll.u32 %s1298_s0, 3  ;;  %s1287_s2 = sld [smem:[#allocation37_spill]] }
  0x1d   : > { %s1014_s16 = smov [#allocation2]   ;;  %s196_s18 = sadd.s32 1, %s1105_s10 }
  0x1e   : > { %s1111_s17 = sshll.u32 %s1014_s16, 4  ;;  %s1115_s19 = sld [smem:[#allocation5 + %s196_s18]]  ;;  %s193_s17 = int_to_ptr.vmem [resolvable:$true] %s1111_s17 }
  0x1f   : > { %s1015_s20 = smov [#allocation2 + $0x1]   ;;  %s218_s0 = sadd.s32 2, %s1105_s10 }
  0x20   : > { %s1117_s21 = sshll.u32 %s1015_s20, 4  ;;  %s1121_s26 = sld [smem:[#allocation5 + %s218_s0]] }
  0x21   : > { %1288 = sst [smem:[#allocation36_spill]] %s1117_s21  ;;  %p178_p11 = scmp.gt.s32.totalorder %s177_s11, 0 }
  0x22   : > { %s175_s15 = scalar_lea.vmem %s1287_s2, %s598_s12  ;;  %p600_p12 = scmp.lt.s32.totalorder %s177_s11, 31 }
  0x23   : > { %v351_v1 = vld [vmem:[%s175_s15] sm:$0xff]  ;;  %s1300_s11 = smov (!%p178_p11, %s177_s11), 0  ;;  %s1016_s14 = smov [#allocation2 + $0x2]  }
  0x24   : > { %vm353_vm0 = vcmp.eq.s32.totalorder %v351_v1, 1  ;;  %vm362_vm1 = vcmp.eq.s32.totalorder %v351_v1, 2  ;;  %s1302_s11 = smov (!%p600_p12, %s1300_s11), 31  ;;  %p198_p13 = scmp.gt.s32.totalorder %s1115_s19, 0 }
  0x25   : > { %v354_v2 = vsel %vm353_vm0, 1, %v1013_v0  ;;  %v363_v3 = vsel %vm362_vm1, 1, %v1013_v0  ;;  %p605_p0 = scmp.lt.s32.totalorder %s1115_s19, 31  ;;  %s182_s13 = scalar_lea.hbm %s1277_s1, %s1302_s11 }
  0x26   : > { %356 = vperm.xlu0 %725, %v354_v2   ;;  %s1129_s15 = sshll.u32 %s1016_s14, 4  ;;  %s190_s16 = sshll.u32 %s182_s13, 4  ;;  %s191_s16 = int_to_ptr.hbm [resolvable:$true] %s190_s16  ;;  %s237_s15 = int_to_ptr.vmem [resolvable:$true] %s1129_s15 }
  0x27   : > { %p220_p1 = scmp.gt.s32.totalorder %s1121_s26, 0  ;;  %p610_p2 = scmp.lt.s32.totalorder %s1121_s26, 31 }
  0x28   : > { %s738_s18 = sshra.s32 %s191_s16, 4  ;;  %s1136_s28 = scalar_lea.hbm %s1277_s1, 32  ;;  %s739_s18 = int_to_ptr.hbm [resolvable:$true] %s738_s18 }
  0x29   : > { %s740_s20 = scalar_lea.hbm %s739_s18, 1  ;;  %p743_p4 = scmp.lt.s32.totalorder %s739_s18, %s1277_s1 }
  0x2a   : > { %p741_p3 = scmp.ne.s32.totalorder %s739_s18, %s740_s20  ;;  %p744_p7 = scmp.lt.s32.totalorder %s1136_s28, %s740_s20 }
  0x2c   : > { %p745_p8 = por %p744_p7, %p743_p4 }
  0x2e   : > { %365 = vperm.xlu0 %725, %v363_v3   ;;  %p746_p9 = pnand %p745_p8, %p741_p3 }
  0x30   : > { %749 = shalt.err (!%p746_p9)  }
  0x31   : > { %195 = dma.hbm_to_vmem [thread:$0]  %s191_s16, 16, %s193_s17, [#allocation3] }
  0x32   : > { %s199_s8 = scalar_select %p198_p13, %s1115_s19, 0 }
  0x33   : > { %s221_s11 = scalar_select %p220_p1, %s1121_s26, 0 }
  0x34   : > { %s1304_s8 = smov (!%p605_p0, %s199_s8), 31 }
  0x35   : > { %s1306_s11 = smov (!%p610_p2, %s221_s11), 31  ;;  %s202_s13 = scalar_lea.hbm %s1277_s1, %s1304_s8 }
  0x36   : > { %s212_s14 = sshll.u32 %s202_s13, 4  ;;  %s224_s0 = scalar_lea.hbm %s1277_s1, %s1306_s11  ;;  %s213_s14 = int_to_ptr.hbm [resolvable:$true] %s212_s14 }
  0x37   : > { %s234_s17 = sshll.u32 %s224_s0, 4  ;;  %s762_s16 = sshra.s32 %s213_s14, 4  ;;  %s763_s16 = int_to_ptr.hbm [resolvable:$true] %s762_s16  ;;  %s235_s17 = int_to_ptr.hbm [resolvable:$true] %s234_s17 }
  0x38   : > { %s764_s29 = scalar_lea.hbm %s763_s16, 1  ;;  %p767_p11 = scmp.lt.s32.totalorder %s763_s16, %s1277_s1 }
  0x39   : > { %p765_p10 = scmp.ne.s32.totalorder %s763_s16, %s764_s29  ;;  %p768_p12 = scmp.lt.s32.totalorder %s1136_s28, %s764_s29 }
  0x3b   : > { %p769_p13 = por %p768_p12, %p767_p11 }
  0x3d   : > { %p770_p0 = pnand %p769_p13, %p765_p10 }
  0x3f   : > { %773 = shalt.err (!%p770_p0)  }
  0x40   : > { %s1289_s26 = sld [smem:[#allocation36_spill]]  ;;  %s1291_s11 = sadd.s32 3, %s1105_s10 }
  0x41   : > { %s241_s21 = sld [smem:[#allocation5 + %s1291_s11]]  ;;  %s786_s12 = sshra.s32 %s235_s17, 4  ;;  %s787_s12 = int_to_ptr.hbm [resolvable:$true] %s786_s12 }
  0x42   : > { %s788_s13 = scalar_lea.hbm %s787_s12, 1  ;;  %p791_p2 = scmp.lt.s32.totalorder %s787_s12, %s1277_s1 }
  0x43   : > { %p789_p1 = scmp.ne.s32.totalorder %s787_s12, %s788_s13  ;;  %p792_p3 = scmp.lt.s32.totalorder %s1136_s28, %s788_s13 }
  0x45   : > { %p793_p4 = por %p792_p3, %p791_p2 }
  0x46   : > { %s1290_s8 = int_to_ptr.vmem [resolvable:$true] %s1289_s26 }
  0x47   : > { %217 = dma.hbm_to_vmem [thread:$0]  %s213_s14, 16, %s1290_s8, [#allocation3 + $0x1] }
  0x48   : > { %p794_p7 = pnand %p793_p4, %p789_p1 }
  0x4a   : > { %797 = shalt.err (!%p794_p7)  }
  0x4b   : > { %239 = dma.hbm_to_vmem [thread:$0]  %s235_s17, 16, %s237_s15, [#allocation3 + $0x2] }
  0x4c   : > { %s262_s2 = sadd.s32 4, %s1105_s10  ;;  %s1017_s0 = smov [#allocation2 + $0x3]  }
  0x4d   : > { %s1174_s14 = sld [smem:[#allocation5 + %s262_s2]]  ;;  %s258_s16 = sshll.u32 %s1017_s0, 4  ;;  %s259_s16 = int_to_ptr.vmem [resolvable:$true] %s258_s16 }
  0x4e   : > { %s1018_s29 = smov [#allocation2 + $0x4]   ;;  %s284_s26 = sadd.s32 5, %s1105_s10 }
  0x4f   : > { %s1176_s19 = sshll.u32 %s1018_s29, 4  ;;  %p242_p8 = scmp.gt.s32.totalorder %s241_s21, 0  ;;  %s281_s19 = int_to_ptr.vmem [resolvable:$true] %s1176_s19 }
  0x50   : > { %p615_p9 = scmp.lt.s32.totalorder %s241_s21, 31  ;;  %s1179_s8 = sld [smem:[#allocation5 + %s284_s26]] }
  0x51   : > { %s1308_s21 = smov (!%p242_p8, %s241_s21), 0 }
  0x52   : > { %s1310_s21 = smov (!%p615_p9, %s1308_s21), 31 }
  0x53   : > { %p264_p10 = scmp.gt.s32.totalorder %s1174_s14, 0  ;;  %s246_s12 = scalar_lea.hbm %s1277_s1, %s1310_s21 }
  0x54   : > { %p620_p11 = scmp.lt.s32.totalorder %s1174_s14, 31  ;;  %s256_s13 = sshll.u32 %s246_s12, 4  ;;  %s257_s13 = int_to_ptr.hbm [resolvable:$true] %s256_s13 }
  0x55   : > { %s265_s15 = scalar_select %p264_p10, %s1174_s14, 0 }
  0x56   : > { %p286_p12 = scmp.gt.s32.totalorder %s1179_s8, 0  ;;  %s810_s18 = sshra.s32 %s257_s13, 4  ;;  %s811_s18 = int_to_ptr.hbm [resolvable:$true] %s810_s18 }
  0x57   : > { %s812_s20 = scalar_lea.hbm %s811_s18, 1  ;;  %p815_p0 = scmp.lt.s32.totalorder %s811_s18, %s1277_s1 }
  0x58   : > { %p813_p13 = scmp.ne.s32.totalorder %s811_s18, %s812_s20  ;;  %p816_p1 = scmp.lt.s32.totalorder %s1136_s28, %s812_s20 }
  0x5a   : > { %p817_p2 = por %p816_p1, %p815_p0 }
  0x5c   : > { %p818_p3 = pnand %p817_p2, %p813_p13 }
  0x5e   : > { %821 = shalt.err (!%p818_p3)  }
  0x5f   : > { %261 = dma.hbm_to_vmem [thread:$0]  %s257_s13, 16, %s259_s16, [#allocation3 + $0x3] }
  0x60   : > { %s1312_s15 = smov (!%p620_p11, %s265_s15), 31  ;;  %p625_p4 = scmp.lt.s32.totalorder %s1179_s8, 31 }
  0x61   : > { %s287_s21 = scalar_select %p286_p12, %s1179_s8, 0 }
  0x62   : > { %s268_s17 = scalar_lea.hbm %s1277_s1, %s1312_s15  ;;  %s1019_s12 = smov [#allocation2 + $0x5]  }
  0x63   : > { %s278_s11 = sshll.u32 %s268_s17, 4  ;;  %s1200_s18 = sshll.u32 %s1019_s12, 4  ;;  %s279_s11 = int_to_ptr.hbm [resolvable:$true] %s278_s11  ;;  %s303_s18 = int_to_ptr.vmem [resolvable:$true] %s1200_s18 }
  0x64   : > { %s306_s20 = sadd.s32 6, %s1105_s10  ;;  %s834_s16 = sshra.s32 %s279_s11, 4  ;;  %s835_s16 = int_to_ptr.hbm [resolvable:$true] %s834_s16 }
  0x65   : > { %s836_s14 = scalar_lea.hbm %s835_s16, 1  ;;  %p839_p8 = scmp.lt.s32.totalorder %s835_s16, %s1277_s1 }
  0x66   : > { %p837_p7 = scmp.ne.s32.totalorder %s835_s16, %s836_s14  ;;  %p840_p9 = scmp.lt.s32.totalorder %s1136_s28, %s836_s14 }
  0x68   : > { %p841_p10 = por %p840_p9, %p839_p8 }
  0x6a   : > { %p842_p11 = pnand %p841_p10, %p837_p7 }
  0x6c   : > { %845 = shalt.err (!%p842_p11)  }
  0x6d   : > { %283 = dma.hbm_to_vmem [thread:$0]  %s279_s11, 16, %s281_s19, [#allocation3 + $0x4] }
  0x6e   : > { %s1314_s21 = smov (!%p625_p4, %s287_s21), 31  ;;  %s307_s15 = sld [smem:[#allocation5 + %s306_s20]] }
  0x6f   : > { %s290_s26 = scalar_lea.hbm %s1277_s1, %s1314_s21  ;;  %s328_s12 = sadd.s32 7, %s1105_s10 }
  0x70   : > { %s300_s17 = sshll.u32 %s290_s26, 4  ;;  %s301_s17 = int_to_ptr.hbm [resolvable:$true] %s300_s17 }
  0x71   : > { %s858_s16 = sshra.s32 %s301_s17, 4  ;;  %s859_s16 = int_to_ptr.hbm [resolvable:$true] %s858_s16 }
  0x72   : > { %s860_s14 = scalar_lea.hbm %s859_s16, 1  ;;  %p863_p13 = scmp.lt.s32.totalorder %s859_s16, %s1277_s1 }
  0x73   : > { %p861_p12 = scmp.ne.s32.totalorder %s859_s16, %s860_s14  ;;  %p864_p0 = scmp.lt.s32.totalorder %s1136_s28, %s860_s14 }
  0x75   : > { %p865_p1 = por %p864_p0, %p863_p13 }
  0x77   : > { %p866_p2 = pnand %p865_p1, %p861_p12 }
  0x79   : > { %869 = shalt.err (!%p866_p2)  }
  0x7a   : > { %305 = dma.hbm_to_vmem [thread:$0]  %s301_s17, 16, %s303_s18, [#allocation3 + $0x5] }
  0x7b   : > { %s329_s19 = sld [smem:[#allocation5 + %s328_s12]]  ;;  %p308_p3 = scmp.gt.s32.totalorder %s307_s15, 0 }
  0x7c   : > { %p630_p4 = scmp.lt.s32.totalorder %s307_s15, 31  ;;  %s1020_s8 = smov [#allocation2 + $0x6]  }
  0x7d   : > { %s324_s21 = sshll.u32 %s1020_s8, 4  ;;  %s1316_s15 = smov (!%p308_p3, %s307_s15), 0  ;;  %s325_s21 = int_to_ptr.vmem [resolvable:$true] %s324_s21 }
  0x7e   : > { %s1318_s15 = smov (!%p630_p4, %s1316_s15), 31 }
  0x7f   : > { %s312_s0 = scalar_lea.hbm %s1277_s1, %s1318_s15 }
  0x80   : > { %s322_s29 = sshll.u32 %s312_s0, 4  ;;  %s323_s29 = int_to_ptr.hbm [resolvable:$true] %s322_s29 }
  0x81   : > { %p330_p7 = scmp.gt.s32.totalorder %s329_s19, 0  ;;  %p635_p8 = scmp.lt.s32.totalorder %s329_s19, 31 }
  0x82   : > { %s882_s26 = sshra.s32 %s323_s29, 4  ;;  %s883_s26 = int_to_ptr.hbm [resolvable:$true] %s882_s26 }
  0x83   : > { %s884_s18 = scalar_lea.hbm %s883_s26, 1  ;;  %p887_p10 = scmp.lt.s32.totalorder %s883_s26, %s1277_s1 }
  0x84   : > { %p885_p9 = scmp.ne.s32.totalorder %s883_s26, %s884_s18  ;;  %p888_p11 = scmp.lt.s32.totalorder %s1136_s28, %s884_s18 }
  0x86   : > { %p889_p12 = por %p888_p11, %p887_p10 }
  0x88   : > { %p890_p13 = pnand %p889_p12, %p885_p9 }
  0x8a   : > { %893 = shalt.err (!%p890_p13)  }
  0x8b   : > { %327 = dma.hbm_to_vmem [thread:$0]  %s323_s29, 16, %s325_s21, [#allocation3 + $0x6] }
  0x8c   : > { %s331_s15 = scalar_select %p330_p7, %s329_s19, 0 }
  0x8d   : > { %s1021_s16 = smov [#allocation2 + $0x7]  }
  0x8e   : > { %s346_s14 = sshll.u32 %s1021_s16, 4  ;;  %s1320_s15 = smov (!%p635_p8, %s331_s15), 31  ;;  %s347_s14 = int_to_ptr.vmem [resolvable:$true] %s346_s14 }
  0x8f   : > { %s334_s8 = scalar_lea.hbm %s1277_s1, %s1320_s15 }
  0x90   : > { %s344_s11 = sshll.u32 %s334_s8, 4  ;;  %s345_s11 = int_to_ptr.hbm [resolvable:$true] %s344_s11 }
  0x91   : > { %s906_s20 = sshra.s32 %s345_s11, 4  ;;  %s907_s20 = int_to_ptr.hbm [resolvable:$true] %s906_s20 }
  0x92   : > { %s908_s0 = scalar_lea.hbm %s907_s20, 1  ;;  %p911_p1 = scmp.lt.s32.totalorder %s907_s20, %s1277_s1 }
  0x93   : > { %p909_p0 = scmp.ne.s32.totalorder %s907_s20, %s908_s0  ;;  %p912_p2 = scmp.lt.s32.totalorder %s1136_s28, %s908_s0 }
  0x95   : > { %p913_p3 = por %p912_p2, %p911_p1 }
  0x97   : > { %p914_p4 = pnand %p913_p3, %p909_p0 }
  0x99   : > { %917 = shalt.err (!%p914_p4)  }
  0x9a   : > { %349 = dma.hbm_to_vmem [thread:$0]  %s345_s11, 16, %s347_s14, [#allocation3 + $0x7]  ;;  %v352_v4 = vld [vmem:[%s1279_s3] sm:$0xff]  ;;  %v357_v5 = vpop.permute.xlu0 %356 }
  0x9b   : > { %v359_v6 = vperm.slane %v352_v4, 1  ;;  %vm358_vm2 = vcmp.eq.s32.totalorder %v357_v5, 1  ;;  %v350_v7 = vld [vmem:[%s1280_s4] sm:$0xff]  ;;  %v368_v9 = vperm.slane %v352_v4, 2  ;;  %s171_s28 = scalar_lea.vmem [#allocation6], %s1103_s9 }
  0x9d   : > { %v360_v8 = vsel %vm358_vm2, %v359_v6, 0.0 }
  0x9e   : > { %v361_v11 = vadd.f32 %v360_v8, %v350_v7 }
  0xa2   : > { %v366_v10 = vpop.permute.xlu0 %365 }
  0xa3   : > { %vm367_vm3 = vcmp.eq.s32.totalorder %v366_v10, 1 }
  0xa4   : > { %v369_v12 = vsel %vm367_vm3, %v368_v9, 0.0 }
  0xa5   : > { %v370_v13 = vadd.f32 %v369_v12, %v361_v11 }
  0xa6   : > { %976 = dma.done.wait [#allocation3], 16 }
  0xa7   : > { %977 = vsyncadd [#allocation3], 4294967280 }
  0xa8   : > { %978 = dma.done.wait [#allocation3 + $0x1], 16 }
  0xa9   : > { %979 = vsyncadd [#allocation3 + $0x1], 4294967280 }
  0xaa   : > { %980 = dma.done.wait [#allocation3 + $0x2], 16 }
  0xab   : > { %981 = vsyncadd [#allocation3 + $0x2], 4294967280 }
  0xac   : > { %982 = dma.done.wait [#allocation3 + $0x3], 16 }
  0xad   : > { %983 = vsyncadd [#allocation3 + $0x3], 4294967280 }
  0xae   : > { %984 = dma.done.wait [#allocation3 + $0x4], 16 }
  0xaf   : > { %985 = vsyncadd [#allocation3 + $0x4], 4294967280 }
  0xb0   : > { %986 = dma.done.wait [#allocation3 + $0x5], 16 }
  0xb1   : > { %987 = vsyncadd [#allocation3 + $0x5], 4294967280 }
  0xb2   : > { %988 = dma.done.wait [#allocation3 + $0x6], 16 }
  0xb3   : > { %989 = vsyncadd [#allocation3 + $0x6], 4294967280 }
  0xb4   : > { %990 = dma.done.wait [#allocation3 + $0x7], 16 }
  0xb5   : > { %991 = vsyncadd [#allocation3 + $0x7], 4294967280  ;;  %s410_s9 = scalar_lea.hbm %s1281_s5, %s1105_s10  ;;  %s412_s16 = sshll.u32 %s171_s28, 4  ;;  %v396_v14 = vld [vmem:[#allocation2] sm:$0xff]  ;;  %s413_s16 = int_to_ptr.vmem [resolvable:$true] %s412_s16 }
  0xb6   : > { %s414_s14 = sshll.u32 %s410_s9, 4  ;;  %v397_v15 = vadd.f32 %v396_v14, %v370_v13  ;;  %s1292_s13 = sand.u32 1, %s1002_s23   ;;  %s415_s14 = int_to_ptr.hbm [resolvable:$true] %s414_s14 }
  0xb7   : > { %s400_s2 = scalar_lea.sflag [#allocation7], %s1292_s13  ;;  %s944_s8 = sshra.s32 %s415_s14, 4  ;;  %s945_s8 = int_to_ptr.hbm [resolvable:$true] %s944_s8 }
  0xb8   : > { %398 = vst [vmem:[%s171_s28] sm:$0xff] %v397_v15  ;;  %s946_s11 = scalar_lea.hbm %s945_s8, 8  ;;  %s950_s10 = scalar_lea.hbm %s1281_s5, 16 }
  0xb9   : > { %p947_p7 = scmp.ne.s32.totalorder %s945_s8, %s946_s11  ;;  %p951_p10 = scmp.lt.s32.totalorder %s945_s8, %s1281_s5 }
  0xba   : > { %p952_p11 = scmp.lt.s32.totalorder %s950_s10, %s946_s11 }
  0xbb   : > { %p948_p8 = pnand %p947_p7, %p1090_p5 }
  0xbc   : > { %p953_p12 = por %p952_p11, %p951_p10 }
  0xbd   : > { %p949_p9 = pneg %p948_p8 }
  0xbf   : > { %p954_p13 = pnand %p953_p12, %p949_p9 }
  0xc1   : > { %957 = shalt.err (!%p954_p13)
}
  0xc2   : > { %676 = dma.vmem_to_hbm [thread:$0]  (%p1090_p5), %s413_s16, 128, %s415_s14, %s400_s2  }
  0xc3 PF: > { %p682_p0 = scmp.ge.s32.totalorder %s1010_s25, 2  ;;  %s426_s19 = sand.u32 1, %s998_s22  }
  0xc4   : > { %s427_s29 = scalar_lea.sflag [#allocation7], %s426_s19 }
  0xc5   : > { %p679_p1 = pnand %p682_p0, %p1094_p6 }
  0xc7   : > { %p680_p2 = pneg %p679_p1 }
  0xc9   : > { %993 = dma.done.wait (%p680_p2), %s427_s29, 128  }
  0xca   : > { %995 = vsyncadd (%p680_p2), %s427_s29, 4294967168  ;;  %p23_p3 = scmp.ge.s32.totalorder %s1078_s27, 4   ;;  %s1293_s22 = smov %s1002_s23 }
  0xcb   : > { %s1294_s23 = smov %s1006_s24  ;;  %s1295_s24 = smov %s1088_s30 }
  0xcc   : > { %s1296_s25 = smov %s1078_s27  ;;  %25 = sbr.rel (!%p23_p3) target bundleno = 9 (0x9), region = 136 }
  0xd1   :  { %433 = vsyncpa [#allocation7], 1 }
  0xd2   :  { %435 = vsyncpa [#allocation7 + $0x1], 1 }
  0xd3   :  { %436 = vsyncmov [#allocation3] }
  0xd6   :  { %s437_s25 = vpop.sfrf %436 }
  0xd7   :  { %p644_p5 = scmp.ne.s32.totalorder %s437_s25, 0 }
  0xd9   :  { %441 = shalt.err (%p644_p5)  }
  0xda   :  { %443 = vsyncmov [#allocation3 + $0x1] }
  0xdd   :  { %s444_s6 = vpop.sfrf %443 }
  0xde   :  { %p645_p6 = scmp.ne.s32.totalorder %s444_s6, 0 }
  0xe0   :  { %448 = shalt.err (%p645_p6)  }
  0xe1   :  { %450 = vsyncmov [#allocation3 + $0x2] }
  0xe4   :  { %s451_s7 = vpop.sfrf %450 }
  0xe5   :  { %p646_p4 = scmp.ne.s32.totalorder %s451_s7, 0 }
  0xe7   :  { %455 = shalt.err (%p646_p4)  }
  0xe8   :  { %457 = vsyncmov [#allocation3 + $0x3] }
  0xeb   :  { %s458_s18 = vpop.sfrf %457 }
  0xec   :  { %p647_p7 = scmp.ne.s32.totalorder %s458_s18, 0 }
  0xee   :  { %462 = shalt.err (%p647_p7)  }
  0xef   :  { %464 = vsyncmov [#allocation3 + $0x4] }
  0xf2   :  { %s465_s27 = vpop.sfrf %464 }
  0xf3   :  { %p648_p8 = scmp.ne.s32.totalorder %s465_s27, 0 }
  0xf5   :  { %469 = shalt.err (%p648_p8)  }
  0xf6   :  { %471 = vsyncmov [#allocation3 + $0x5] }
  0xf9   :  { %s472_s1 = vpop.sfrf %471 }
  0xfa   :  { %p649_p9 = scmp.ne.s32.totalorder %s472_s1, 0 }
  0xfc   :  { %476 = shalt.err (%p649_p9)  }
  0xfd   :  { %478 = vsyncmov [#allocation3 + $0x6] }
 0x100   :  { %s479_s3 = vpop.sfrf %478 }
 0x101   :  { %p650_p10 = scmp.ne.s32.totalorder %s479_s3, 0 }
 0x103   :  { %483 = shalt.err (%p650_p10)  }
 0x104   :  { %485 = vsyncmov [#allocation3 + $0x7] }
 0x107   :  { %s486_s4 = vpop.sfrf %485 }
 0x108   :  { %p651_p11 = scmp.ne.s32.totalorder %s486_s4, 0 }
 0x10a   :  { %490 = shalt.err (%p651_p11)  }
 0x10b   :  { %492 = vsyncmov [#allocation3 + $0x8] }
 0x10e   :  { %s493_s5 = vpop.sfrf %492 }
 0x10f   :  { %p652_p12 = scmp.ne.s32.totalorder %s493_s5, 0 }
 0x111   :  { %497 = shalt.err (%p652_p12)  }
 0x112   :  { %499 = vsyncmov [#allocation3 + $0x9] }
 0x115   :  { %s500_s22 = vpop.sfrf %499 }
 0x116   :  { %p653_p13 = scmp.ne.s32.totalorder %s500_s22, 0 }
 0x118   :  { %504 = shalt.err (%p653_p13)  }
 0x119   :  { %506 = vsyncmov [#allocation3 + $0xa] }
 0x11c   :  { %s507_s23 = vpop.sfrf %506 }
 0x11d   :  { %p654_p0 = scmp.ne.s32.totalorder %s507_s23, 0 }
 0x11f   :  { %511 = shalt.err (%p654_p0)  }
 0x120   :  { %513 = vsyncmov [#allocation3 + $0xb] }
 0x123   :  { %s514_s24 = vpop.sfrf %513 }
 0x124   :  { %p655_p1 = scmp.ne.s32.totalorder %s514_s24, 0 }
 0x126   :  { %518 = shalt.err (%p655_p1)  }
 0x127   :  { %520 = vsyncmov [#allocation3 + $0xc] }
 0x12a   :  { %s521_s30 = vpop.sfrf %520 }
 0x12b   :  { %p656_p2 = scmp.ne.s32.totalorder %s521_s30, 0 }
 0x12d   :  { %525 = shalt.err (%p656_p2)  }
 0x12e   :  { %527 = vsyncmov [#allocation3 + $0xd] }
 0x131   :  { %s528_s17 = vpop.sfrf %527 }
 0x132   :  { %p657_p3 = scmp.ne.s32.totalorder %s528_s17, 0 }
 0x134   :  { %532 = shalt.err (%p657_p3)  }
 0x135   :  { %534 = vsyncmov [#allocation3 + $0xe] }
 0x138   :  { %s535_s28 = vpop.sfrf %534 }
 0x139   :  { %p658_p5 = scmp.ne.s32.totalorder %s535_s28, 0 }
 0x13b   :  { %539 = shalt.err (%p658_p5)  }
 0x13c   :  { %541 = vsyncmov [#allocation3 + $0xf] }
 0x13f   :  { %s542_s12 = vpop.sfrf %541 }
 0x140   :  { %p659_p6 = scmp.ne.s32.totalorder %s542_s12, 0 }
 0x142   :  { %546 = shalt.err (%p659_p6)  }

</bundles_post_ra>
